<compile_context>
chip_gen: v6e
topology: v6e:2x2x1
jax: 0.10.0
libtpu: 0.0.40
codegen_flags: <defaults>
</compile_context>

<pallas_src>
import jax
import jax.numpy as jnp
from jax import lax
from jax.experimental import pallas as pl
from jax.experimental.pallas import tpu as pltpu

# ----------------------------- config -----------------------------
IMAGE_SIZE = 16
PATCH_SIZE = 8
IN_CHANS = 3
EMBED_DIM = 96
NUM_HEADS = 12
MLP_RATIO = 4.0
DEPTH = 12
MASK_RATIO = 0.75
EPS = 1e-5
BATCH = 2

HEAD_DIM = EMBED_DIM // NUM_HEADS                      # 8
MLP_HIDDEN = int(EMBED_DIM * MLP_RATIO)                # 384
NUM_PATCHES = (IMAGE_SIZE // PATCH_SIZE) ** 2          # 4
PATCH_DIM = IN_CHANS * PATCH_SIZE * PATCH_SIZE         # 192
OUT_DIM = PATCH_SIZE * PATCH_SIZE * IN_CHANS           # 192

LANE = 128


def _ceil_to(x, m):
    return ((x + m - 1) // m) * m


D_PAD = _ceil_to(EMBED_DIM, LANE)                      # 128
PATCH_DIM_PAD = _ceil_to(PATCH_DIM, LANE)              # 256
OUT_DIM_PAD = _ceil_to(OUT_DIM, LANE)                  # 256
BN = BATCH * NUM_PATCHES                               # 8 (= sublane count)
NUM_GROUPS = D_PAD // HEAD_DIM                         # 16 lane groups of 8
NEG_INF = -1e30

# The lane-blocked attention packing (per-head scores occupy 8 consecutive lanes)
# relies on the per-head key count (BN) equaling HEAD_DIM so one 8x8 block-diagonal
# lane mask serves the score matmul, the value matmul and the group-sum matmul.
assert HEAD_DIM == BN, "lane-blocked attention assumes HEAD_DIM == BATCH*NUM_PATCHES"
assert MLP_HIDDEN == 3 * D_PAD
assert D_PAD == LANE and BN <= 8


# ----------------------- in-kernel helpers ------------------------
def _layernorm(x, g, b, dmask):
    # Padded columns of x are maintained as exact zeros, so sums over D_PAD equal
    # sums over the real EMBED_DIM columns; dmask zeroes the (x - mu) tail for the
    # variance.  g/b are zero-padded, so padded output columns stay 0.
    mu = jnp.sum(x, axis=-1, keepdims=True) * (1.0 / EMBED_DIM)
    d = (x - mu) * dmask
    var = jnp.sum(d * d, axis=-1, keepdims=True) * (1.0 / EMBED_DIM)
    return (x - mu) * lax.rsqrt(var + EPS) * g + b


def _gelu(x):
    # TODO(synk): nn.GELU default is exact erf; tanh approximation used here.
    c = 0.7978845608028654  # sqrt(2/pi)
    return 0.5 * x * (1.0 + jnp.tanh(c * (x + 0.044715 * x * x * x)))


def _bdot(a, b):
    # bf16 x bf16 matmul, f32 accumulate (weights already bf16; cast LHS).
    return jnp.dot(a.astype(jnp.bfloat16), b.astype(jnp.bfloat16),
                   preferred_element_type=jnp.float32)


def _bdot_t(a, b):
    # a @ b.T (contract last dims of both), bf16 inputs, f32 accumulate.
    return lax.dot_general(a.astype(jnp.bfloat16), b.astype(jnp.bfloat16),
                           (((1,), (1,)), ((), ())),
                           preferred_element_type=jnp.float32)


def _fdot(a, b):
    return jnp.dot(a, b, preferred_element_type=jnp.float32)


# --------------------------- fused kernel ------------------------------
def mae_kernel(pv_ref, mask_ref, patchw_ref, posbias_ref, svec_ref, gmask_ref,
               decw1_ref, decw2_ref,
               wqkv_ref, projw_ref, fc1w_ref, fc2w_ref, lvec_ref,
               patches_out_ref, recon_out_ref,
               x_ref):
    d = pl.program_id(0)
    Dp = D_PAD

    # ---- resident constant slabs ----
    sv = svec_ref[...]                                    # (8, 2*Dp) f32
    patch_b = sv[0:1, 0:Dp]
    norm_g = sv[0:1, Dp:2 * Dp]
    norm_b = sv[1:2, 0:Dp]
    dmask = sv[1:2, Dp:2 * Dp]
    mtok = sv[2:3, 0:Dp]
    dec_b1 = sv[2:3, Dp:2 * Dp]
    dec_lng = sv[3:4, 0:Dp]
    dec_lnb = sv[3:4, Dp:2 * Dp]
    dec_b2 = sv[4:5, :]                                   # (1, OUT_DIM_PAD)

    pb = posbias_ref[...]                                 # (BN, 2*Dp)
    pos = pb[:, 0:Dp]
    attn_bias = pb[:, Dp:2 * Dp]                          # cross-batch -1e30, lane-blocked

    gmask = gmask_ref[...]                                # (Dp, Dp) 8x8 block-diagonal 0/1

    # ---- first grid step: PatchEmbed matmul, +pos, mask-token substitution ----
    @pl.when(d == 0)
    def _():
        patches = _fdot(pv_ref[...], patchw_ref[...]) + patch_b     # (BN, Dp)
        patches_out_ref[...] = patches
        xin = patches + pos
        keep = mask_ref[...] > 0.5
        x_ref[...] = jnp.where(keep, xin, jnp.broadcast_to(mtok, (BN, Dp)))

    # ---- encoder block d (weights for this depth were pipelined into VMEM) ----
    lv = lvec_ref[0]                                      # (8, 3*Dp) per-layer vectors
    bqkv = lv[0:1, :]                                     # (1, 3*Dp), Q part pre-scaled
    fc1_b = lv[1:2, :]                                    # (1, MLP_HIDDEN)
    ln1_g = lv[2:3, 0:Dp]
    ln1_b = lv[2:3, Dp:2 * Dp]
    ln2_g = lv[2:3, 2 * Dp:3 * Dp]
    ln2_b = lv[3:4, 0:Dp]
    proj_b = lv[3:4, Dp:2 * Dp]
    fc2_b = lv[3:4, 2 * Dp:3 * Dp]

    x = x_ref[...]
    h1 = _layernorm(x, ln1_g, ln1_b, dmask)

    # fused QKV: one (8,128)@(128,384) matmul; heads lane-blocked, scale folded in
    qkv = _bdot(h1, wqkv_ref[0]) + bqkv                   # (BN, 3*Dp) f32
    q = qkv[:, 0:Dp]
    k = qkv[:, Dp:2 * Dp]
    v = qkv[:, 2 * Dp:3 * Dp]

    # scores: block-diagonal replica k_rep[c, r] = k[c % 8, r] on diagonal 8x8 blocks
    k_rep = jnp.tile(k, (NUM_GROUPS, 1)) * gmask          # (Dp, Dp)
    s = _bdot_t(q, k_rep) + attn_bias                     # (BN, Dp) lane-blocked scores
    # Softmax is invariant to a per-row shift, so subtracting the row-global max
    # keeps every head's softmax exact while bounding exp().
    s = s - jnp.max(s, axis=-1, keepdims=True)
    p = jnp.exp(s)
    denom = _fdot(p, gmask)                               # per-8-lane-group sums (f32)
    p = p * pl.reciprocal(denom, approx=True)

    v_rep = jnp.tile(v, (NUM_GROUPS, 1)) * gmask          # (Dp, Dp)
    o = _bdot(p, v_rep)                                   # (BN, Dp) lane-blocked head outs
    x = x + _bdot(o, projw_ref[0]) + proj_b               # fused output proj, residual 1

    h2 = _layernorm(x, ln2_g, ln2_b, dmask)
    h2 = _gelu(_bdot(h2, fc1w_ref[0]) + fc1_b)
    h2 = _bdot(h2, fc2w_ref[0]) + fc2_b
    x = x + h2                                            # residual 2
    x_ref[...] = x

    # ---- last grid step: final LayerNorm, +pos, MLP decoder ----
    @pl.when(d == DEPTH - 1)
    def _():
        y = _layernorm(x, norm_g, norm_b, dmask) + pos
        h = _fdot(y, decw1_ref[...]) + dec_b1
        h = _gelu(_layernorm(h, dec_lng, dec_lnb, dmask))
        recon_out_ref[...] = _fdot(h, decw2_ref[...]) + dec_b2


# --------------------------- wrapper ------------------------------
def extract_patches(imgs):
    # NCHW -> (B, N, C*p*p), flattened in (C, ph, pw) order.
    B, C, H, W = imgs.shape
    p = PATCH_SIZE
    x = imgs.reshape(B, C, H // p, p, W // p, p)
    x = x.transpose(0, 2, 4, 1, 3, 5)
    return x.reshape(B, (H // p) * (W // p), C * p * p)


def mae_forward(imgs, packed, mask_key):
    B = imgs.shape[0]
    assert B == BATCH, "kernel packing is specialized to BATCH"

    pv = extract_patches(imgs).reshape(B * NUM_PATCHES, PATCH_DIM)
    pv = jnp.pad(pv, ((0, 0), (0, PATCH_DIM_PAD - PATCH_DIM)))

    # random masking: one permutation shared across the batch (matches reference)
    num_masked = int(MASK_RATIO * NUM_PATCHES)
    perm = jax.random.permutation(mask_key, NUM_PATCHES)
    mask_indices = perm[:num_masked]
    mask1d = jnp.ones((NUM_PATCHES,), jnp.float32).at[mask_indices].set(0.0)
    mask_full = jnp.broadcast_to(jnp.tile(mask1d, (B,))[:, None], (BN, D_PAD))

    def const2d(shape):
        return pl.BlockSpec(shape, lambda i: (0, 0))

    def layer3d(shape):
        return pl.BlockSpec(shape, lambda i: (i, 0, 0))

    patches_p, recon_p = pl.pallas_call(
        mae_kernel,
        grid=(DEPTH,),
        out_shape=(jax.ShapeDtypeStruct((BN, D_PAD), jnp.float32),
                   jax.ShapeDtypeStruct((BN, OUT_DIM_PAD), jnp.float32)),
        in_specs=[
            const2d((BN, PATCH_DIM_PAD)),           # pv
            const2d((BN, D_PAD)),                   # keep-mask
            const2d((PATCH_DIM_PAD, D_PAD)),        # patch embed weight (f32)
            const2d((BN, 2 * D_PAD)),               # pos | tiled cross-batch attn bias
            const2d((8, 2 * D_PAD)),                # small resident vectors slab
            const2d((D_PAD, D_PAD)),                # 8x8 block-diagonal lane mask
            const2d((D_PAD, D_PAD)),                # decoder w1 (f32)
            const2d((D_PAD, OUT_DIM_PAD)),          # decoder w2 (f32)
            layer3d((1, D_PAD, 3 * D_PAD)),         # fused QKV weight (bf16, per layer)
            layer3d((1, D_PAD, D_PAD)),             # attn output proj (bf16, per layer)
            layer3d((1, D_PAD, MLP_HIDDEN)),        # fc1 weight (bf16, per layer)
            layer3d((1, MLP_HIDDEN, D_PAD)),        # fc2 weight (bf16, per layer)
            layer3d((1, 8, 3 * D_PAD)),             # per-layer bias/gain slab (f32)
        ],
        out_specs=(pl.BlockSpec((BN, D_PAD), lambda i: (0, 0)),
                   pl.BlockSpec((BN, OUT_DIM_PAD), lambda i: (0, 0))),
        scratch_shapes=[pltpu.VMEM((BN, D_PAD), jnp.float32)],    # persistent token state
        compiler_params=pltpu.CompilerParams(
            dimension_semantics=("arbitrary",),      # depth is sequential (carried state)
            vmem_limit_bytes=8 * 1024 * 1024),
    )(pv, mask_full, packed["patch_w"], packed["posbias"], packed["svec"],
      packed["gmask"], packed["dec_w1"], packed["dec_w2"],
      packed["wqkv"], packed["projw"], packed["fc1w"], packed["fc2w"], packed["lvec"])

    patches = patches_p[:, :EMBED_DIM].reshape(B, NUM_PATCHES, EMBED_DIM)
    recon = recon_p[:, :OUT_DIM].reshape(B, NUM_PATCHES, OUT_DIM)
    return recon, patches, mask_indices


# ----------------------- parameter creation ------------------------
def init_params(key):
    def nrm(k, shape, scale=0.02):
        return (scale * jax.random.normal(k, shape)).astype(jnp.float32)

    keys = iter(jax.random.split(key, 8 + DEPTH))
    params = {
        "patch_w": nrm(next(keys), (PATCH_DIM, EMBED_DIM)),
        "patch_b": jnp.zeros((1, EMBED_DIM), jnp.float32),
        "pos_embed": nrm(next(keys), (1, NUM_PATCHES, EMBED_DIM)),
        "mask_token": nrm(next(keys), (1, 1, EMBED_DIM)),
        "norm_g": jnp.ones((1, EMBED_DIM), jnp.float32),
        "norm_b": jnp.zeros((1, EMBED_DIM), jnp.float32),
        "dec": {
            "w1": nrm(next(keys), (EMBED_DIM, EMBED_DIM)),
            "b1": jnp.zeros((1, EMBED_DIM), jnp.float32),
            "ln_g": jnp.ones((1, EMBED_DIM), jnp.float32),
            "ln_b": jnp.zeros((1, EMBED_DIM), jnp.float32),
            "w2": nrm(next(keys), (EMBED_DIM, OUT_DIM)),
            "b2": jnp.zeros((1, OUT_DIM), jnp.float32),
        },
        "blocks": [],
    }
    for _ in range(DEPTH):
        bk = jax.random.split(next(keys), 4)
        params["blocks"].append({
            "ln1_g": jnp.ones((1, EMBED_DIM), jnp.float32),
            "ln1_b": jnp.zeros((1, EMBED_DIM), jnp.float32),
            "qkv_w": nrm(bk[0], (EMBED_DIM, 3 * EMBED_DIM)),
            "qkv_b": jnp.zeros((1, 3 * EMBED_DIM), jnp.float32),
            "proj_w": nrm(bk[1], (EMBED_DIM, EMBED_DIM)),
            "proj_b": jnp.zeros((1, EMBED_DIM), jnp.float32),
            "ln2_g": jnp.ones((1, EMBED_DIM), jnp.float32),
            "ln2_b": jnp.zeros((1, EMBED_DIM), jnp.float32),
            "fc1_w": nrm(bk[2], (EMBED_DIM, MLP_HIDDEN)),
            "fc1_b": jnp.zeros((1, MLP_HIDDEN), jnp.float32),
            "fc2_w": nrm(bk[3], (MLP_HIDDEN, EMBED_DIM)),
            "fc2_b": jnp.zeros((1, EMBED_DIM), jnp.float32),
        })
    return params


def pack_params(params):
    """Repack torch-layout params into padded, lane-blocked, depth-stacked slabs."""
    D, Dp = EMBED_DIM, D_PAD
    scale = float(HEAD_DIM) ** -0.5

    def pad_last(x, target):
        return jnp.pad(x, [(0, 0)] * (x.ndim - 1) + [(0, target - x.shape[-1])])

    def pad2(x, rows, cols):
        return jnp.pad(x, ((0, rows - x.shape[0]), (0, cols - x.shape[1])))

    dmask = (jnp.arange(Dp) < D).astype(jnp.float32)

    # small resident vectors packed into one (8, 2*Dp) slab
    svec = jnp.zeros((8, 2 * Dp), jnp.float32)
    svec = svec.at[0, :Dp].set(pad_last(params["patch_b"], Dp)[0])
    svec = svec.at[0, Dp:].set(pad_last(params["norm_g"], Dp)[0])
    svec = svec.at[1, :Dp].set(pad_last(params["norm_b"], Dp)[0])
    svec = svec.at[1, Dp:].set(dmask)
    svec = svec.at[2, :Dp].set(pad_last(params["mask_token"][0], Dp)[0])
    svec = svec.at[2, Dp:].set(pad_last(params["dec"]["b1"], Dp)[0])
    svec = svec.at[3, :Dp].set(pad_last(params["dec"]["ln_g"], Dp)[0])
    svec = svec.at[3, Dp:].set(pad_last(params["dec"]["ln_b"], Dp)[0])
    svec = svec.at[4, :].set(pad_last(params["dec"]["b2"], OUT_DIM_PAD)[0])

    # positional embedding tiled over batch | cross-batch additive bias (lane-blocked)
    pos = jnp.tile(pad_last(params["pos_embed"][0], Dp), (BATCH, 1))          # (BN, Dp)
    rb = jnp.repeat(jnp.arange(BATCH), NUM_PATCHES)
    bias8 = jnp.where(rb[:, None] == rb[None, :], 0.0, NEG_INF).astype(jnp.float32)
    posbias = jnp.concatenate([pos, jnp.tile(bias8, (1, NUM_GROUPS))], axis=1)

    # 8x8 block-diagonal lane mask (also the softmax group-sum matrix)
    grp = jnp.arange(Dp) // HEAD_DIM
    gmask = (grp[:, None] == grp[None, :]).astype(jnp.float32)

    packed = {
        "svec": svec,
        "posbias": posbias,
        "gmask": gmask,
        "patch_w": pad2(params["patch_w"], PATCH_DIM_PAD, Dp),
        "dec_w1": pad2(params["dec"]["w1"], Dp, Dp),
        "dec_w2": pad2(params["dec"]["w2"], Dp, OUT_DIM_PAD),
    }

    wqkv_l, projw_l, fc1w_l, fc2w_l, lvec_l = [], [], [], [], []
    for blk in params["blocks"]:
        qw, qb = blk["qkv_w"], blk["qkv_b"]
        # fused QKV weight, heads lane-blocked; attention scale folded into Q part
        w = jnp.zeros((Dp, 3 * Dp), jnp.float32)
        w = w.at[:D, 0:D].set(qw[:, 0:D] * scale)
        w = w.at[:D, Dp:Dp + D].set(qw[:, D:2 * D])
        w = w.at[:D, 2 * Dp:2 * Dp + D].set(qw[:, 2 * D:3 * D])
        wqkv_l.append(w.astype(jnp.bfloat16))

        # per-layer bias/gain slab (f32): row0 qkv bias, row1 fc1 bias,
        # row2 [ln1_g|ln1_b|ln2_g], row3 [ln2_b|proj_b|fc2_b]
        lv = jnp.zeros((8, 3 * Dp), jnp.float32)
        lv = lv.at[0, 0:D].set(qb[0, 0:D] * scale)
        lv = lv.at[0, Dp:Dp + D].set(qb[0, D:2 * D])
        lv = lv.at[0, 2 * Dp:2 * Dp + D].set(qb[0, 2 * D:3 * D])
        lv = lv.at[1, 0:MLP_HIDDEN].set(blk["fc1_b"][0])
        lv = lv.at[2, 0:D].set(blk["ln1_g"][0])
        lv = lv.at[2, Dp:Dp + D].set(blk["ln1_b"][0])
        lv = lv.at[2, 2 * Dp:2 * Dp + D].set(blk["ln2_g"][0])
        lv = lv.at[3, 0:D].set(blk["ln2_b"][0])
        lv = lv.at[3, Dp:Dp + D].set(blk["proj_b"][0])
        lv = lv.at[3, 2 * Dp:2 * Dp + D].set(blk["fc2_b"][0])
        lvec_l.append(lv)

        projw_l.append(pad2(blk["proj_w"], Dp, Dp).astype(jnp.bfloat16))
        fc1w_l.append(pad2(blk["fc1_w"], Dp, MLP_HIDDEN).astype(jnp.bfloat16))
        fc2w_l.append(pad2(blk["fc2_w"], MLP_HIDDEN, Dp).astype(jnp.bfloat16))

    packed.update(
        wqkv=jnp.stack(wqkv_l),          # (DEPTH, Dp, 3*Dp) bf16
        projw=jnp.stack(projw_l),        # (DEPTH, Dp, Dp)   bf16
        fc1w=jnp.stack(fc1w_l),          # (DEPTH, Dp, MLP_HIDDEN) bf16
        fc2w=jnp.stack(fc2w_l),          # (DEPTH, MLP_HIDDEN, Dp) bf16
        lvec=jnp.stack(lvec_l),          # (DEPTH, 8, 3*Dp) f32
    )
    return packed


# ------------------------------ main --------------------------------
if __name__ == "__main__":
    root = jax.random.PRNGKey(0)
    k_img, k_param, k_mask = jax.random.split(root, 3)

    imgs = jax.random.normal(k_img, (BATCH, IN_CHANS, IMAGE_SIZE, IMAGE_SIZE),
                             dtype=jnp.float32)
    params = init_params(k_param)
    packed = pack_params(params)          # one-time repack/pad, outside the jit

    fwd = jax.jit(mae_forward)
    recon, patches, mask_indices = fwd(imgs, packed, k_mask)
    jax.block_until_ready((recon, patches, mask_indices))

    assert recon.shape == (BATCH, NUM_PATCHES, OUT_DIM)
    assert patches.shape == (BATCH, NUM_PATCHES, EMBED_DIM)
    assert mask_indices.shape == (int(MASK_RATIO * NUM_PATCHES),)
    assert bool(jnp.all(jnp.isfinite(recon))) and bool(jnp.all(jnp.isfinite(patches)))

    print("KERNEL_OK")
</pallas_src>

<mosaic_0001>
module attributes {stable_mosaic.version = 11 : i64} {
  func.func @mae_kernel(%arg0: i32, %arg1: memref<8x256xf32, #tpu.memory_space<vmem>>, %arg2: memref<8x128xf32, #tpu.memory_space<vmem>>, %arg3: memref<256x128xf32, #tpu.memory_space<vmem>>, %arg4: memref<8x256xf32, #tpu.memory_space<vmem>>, %arg5: memref<8x256xf32, #tpu.memory_space<vmem>>, %arg6: memref<128x128xf32, #tpu.memory_space<vmem>>, %arg7: memref<128x128xf32, #tpu.memory_space<vmem>>, %arg8: memref<128x256xf32, #tpu.memory_space<vmem>>, %arg9: memref<1x128x384xbf16, #tpu.memory_space<vmem>>, %arg10: memref<1x128x128xbf16, #tpu.memory_space<vmem>>, %arg11: memref<1x128x384xbf16, #tpu.memory_space<vmem>>, %arg12: memref<1x384x128xbf16, #tpu.memory_space<vmem>>, %arg13: memref<1x8x384xf32, #tpu.memory_space<vmem>>, %arg14: memref<8x128xf32, #tpu.memory_space<vmem>>, %arg15: memref<8x256xf32, #tpu.memory_space<vmem>>, %arg16: memref<8x128xf32, #tpu.memory_space<vmem>>) attributes {dimension_semantics = [#tpu.dimension_semantics<arbitrary>], iteration_bounds = array<i64: 12>, scalar_prefetch = 0 : i64, scratch_operands = 1 : i64, tpu.core_type = #tpu.core_type<tc>, window_params = [{pipeline_mode = #tpu.pipeline_mode<synchronous>, transform_indices = @transform_0, window_bounds = array<i64: 8, 256>}, {pipeline_mode = #tpu.pipeline_mode<synchronous>, transform_indices = @transform_1, window_bounds = array<i64: 8, 128>}, {pipeline_mode = #tpu.pipeline_mode<synchronous>, transform_indices = @transform_2, window_bounds = array<i64: 256, 128>}, {pipeline_mode = #tpu.pipeline_mode<synchronous>, transform_indices = @transform_3, window_bounds = array<i64: 8, 256>}, {pipeline_mode = #tpu.pipeline_mode<synchronous>, transform_indices = @transform_4, window_bounds = array<i64: 8, 256>}, {pipeline_mode = #tpu.pipeline_mode<synchronous>, transform_indices = @transform_5, window_bounds = array<i64: 128, 128>}, {pipeline_mode = #tpu.pipeline_mode<synchronous>, transform_indices = @transform_6, window_bounds = array<i64: 128, 128>}, {pipeline_mode = #tpu.pipeline_mode<synchronous>, transform_indices = @transform_7, window_bounds = array<i64: 128, 256>}, {transform_indices = @transform_8, window_bounds = array<i64: 1, 128, 384>}, {transform_indices = @transform_9, window_bounds = array<i64: 1, 128, 128>}, {transform_indices = @transform_10, window_bounds = array<i64: 1, 128, 384>}, {transform_indices = @transform_11, window_bounds = array<i64: 1, 384, 128>}, {transform_indices = @transform_12, window_bounds = array<i64: 1, 8, 384>}, {pipeline_mode = #tpu.pipeline_mode<synchronous>, transform_indices = @transform_13, window_bounds = array<i64: 8, 128>}, {pipeline_mode = #tpu.pipeline_mode<synchronous>, transform_indices = @transform_14, window_bounds = array<i64: 8, 256>}]} {
    %c0 = arith.constant 0 : index
    %c0_0 = arith.constant 0 : index
    %0 = vector.load %arg5[%c0, %c0_0] : memref<8x256xf32, #tpu.memory_space<vmem>>, vector<8x256xf32>
    %1 = vector.extract_strided_slice %0 {offsets = [0, 0], sizes = [1, 128], strides = [1, 1]} : vector<8x256xf32> to vector<1x128xf32>
    %2 = vector.extract_strided_slice %0 {offsets = [0, 128], sizes = [1, 128], strides = [1, 1]} : vector<8x256xf32> to vector<1x128xf32>
    %3 = vector.extract_strided_slice %0 {offsets = [1, 0], sizes = [1, 128], strides = [1, 1]} : vector<8x256xf32> to vector<1x128xf32>
    %4 = vector.extract_strided_slice %0 {offsets = [1, 128], sizes = [1, 128], strides = [1, 1]} : vector<8x256xf32> to vector<1x128xf32>
    %5 = vector.extract_strided_slice %0 {offsets = [2, 0], sizes = [1, 128], strides = [1, 1]} : vector<8x256xf32> to vector<1x128xf32>
    %6 = vector.extract_strided_slice %0 {offsets = [2, 128], sizes = [1, 128], strides = [1, 1]} : vector<8x256xf32> to vector<1x128xf32>
    %7 = vector.extract_strided_slice %0 {offsets = [3, 0], sizes = [1, 128], strides = [1, 1]} : vector<8x256xf32> to vector<1x128xf32>
    %8 = vector.extract_strided_slice %0 {offsets = [3, 128], sizes = [1, 128], strides = [1, 1]} : vector<8x256xf32> to vector<1x128xf32>
    %9 = vector.extract_strided_slice %0 {offsets = [4, 0], sizes = [1, 256], strides = [1, 1]} : vector<8x256xf32> to vector<1x256xf32>
    %c0_1 = arith.constant 0 : index
    %c0_2 = arith.constant 0 : index
    %10 = vector.load %arg4[%c0_1, %c0_2] : memref<8x256xf32, #tpu.memory_space<vmem>>, vector<8x256xf32>
    %11 = vector.extract_strided_slice %10 {offsets = [0, 0], sizes = [8, 128], strides = [1, 1]} : vector<8x256xf32> to vector<8x128xf32>
    %12 = vector.extract_strided_slice %10 {offsets = [0, 128], sizes = [8, 128], strides = [1, 1]} : vector<8x256xf32> to vector<8x128xf32>
    %c0_3 = arith.constant 0 : index
    %c0_4 = arith.constant 0 : index
    %13 = vector.load %arg6[%c0_3, %c0_4] : memref<128x128xf32, #tpu.memory_space<vmem>>, vector<128x128xf32>
    %c0_i32 = arith.constant 0 : i32
    %14 = arith.cmpi eq, %arg0, %c0_i32 : i32
    %15 = arith.extui %14 : i1 to i32
    %c0_i32_5 = arith.constant 0 : i32
    %16 = arith.cmpi ne, %15, %c0_i32_5 : i32
    scf.if %16 {
      %c0_47 = arith.constant 0 : index
      %c0_48 = arith.constant 0 : index
      %141 = vector.load %arg1[%c0_47, %c0_48] : memref<8x256xf32, #tpu.memory_space<vmem>>, vector<8x256xf32>
      %c0_49 = arith.constant 0 : index
      %c0_50 = arith.constant 0 : index
      %142 = vector.load %arg3[%c0_49, %c0_50] : memref<256x128xf32, #tpu.memory_space<vmem>>, vector<256x128xf32>
      %cst_51 = arith.constant dense<0.000000e+00> : vector<8x128xf32>
      %143 = tpu.matmul %141, %142, %cst_51 {dimension_numbers = #tpu.dot_dimension_numbers<[1], [0], [0], [1], [0, 0, 1, 1], [], []>} : vector<8x256xf32>, vector<256x128xf32>, vector<8x128xf32> -> vector<8x128xf32>
      %144 = vector.broadcast %1 : vector<1x128xf32> to vector<8x128xf32>
      %145 = arith.addf %143, %144 : vector<8x128xf32>
      %c0_52 = arith.constant 0 : index
      %c0_53 = arith.constant 0 : index
      %146 = vector.load %arg14[%c0_52, %c0_53] : memref<8x128xf32, #tpu.memory_space<vmem>>, vector<8x128xf32>
      tpu.vector_store %arg14[%c0_52, %c0_53], %145 {strides = array<i32>} : memref<8x128xf32, #tpu.memory_space<vmem>>, vector<8x128xf32>,
      %147 = arith.addf %145, %11 : vector<8x128xf32>
      %c0_54 = arith.constant 0 : index
      %c0_55 = arith.constant 0 : index
      %148 = vector.load %arg2[%c0_54, %c0_55] : memref<8x128xf32, #tpu.memory_space<vmem>>, vector<8x128xf32>
      %cst_56 = arith.constant 5.000000e-01 : f32
      %149 = vector.broadcast %cst_56 : f32 to vector<8x128xf32>
      %150 = arith.cmpf ogt, %148, %149 : vector<8x128xf32>
      %151 = vector.shape_cast %5 : vector<1x128xf32> to vector<1x128xf32>
      %152 = vector.broadcast %151 : vector<1x128xf32> to vector<8x128xf32>
      %153 = arith.select %150, %147, %152 : vector<8x128xi1>, vector<8x128xf32>
      %c0_57 = arith.constant 0 : index
      %c0_58 = arith.constant 0 : index
      %154 = vector.load %arg16[%c0_57, %c0_58] : memref<8x128xf32, #tpu.memory_space<vmem>>, vector<8x128xf32>
      tpu.vector_store %arg16[%c0_57, %c0_58], %153 {strides = array<i32>} : memref<8x128xf32, #tpu.memory_space<vmem>>, vector<8x128xf32>,
    } else {
    }
    %c0_6 = arith.constant 0 : index
    %c0_7 = arith.constant 0 : index
    %c0_8 = arith.constant 0 : index
    %17 = vector.load %arg13[%c0_6, %c0_7, %c0_8] : memref<1x8x384xf32, #tpu.memory_space<vmem>>, vector<1x8x384xf32>
    %18 = vector.shape_cast %17 : vector<1x8x384xf32> to vector<8x384xf32>
    %19 = vector.extract_strided_slice %18 {offsets = [0, 0], sizes = [1, 384], strides = [1, 1]} : vector<8x384xf32> to vector<1x384xf32>
    %20 = vector.extract_strided_slice %18 {offsets = [1, 0], sizes = [1, 384], strides = [1, 1]} : vector<8x384xf32> to vector<1x384xf32>
    %21 = vector.extract_strided_slice %18 {offsets = [2, 0], sizes = [1, 128], strides = [1, 1]} : vector<8x384xf32> to vector<1x128xf32>
    %22 = vector.extract_strided_slice %18 {offsets = [2, 128], sizes = [1, 128], strides = [1, 1]} : vector<8x384xf32> to vector<1x128xf32>
    %23 = vector.extract_strided_slice %18 {offsets = [2, 256], sizes = [1, 128], strides = [1, 1]} : vector<8x384xf32> to vector<1x128xf32>
    %24 = vector.extract_strided_slice %18 {offsets = [3, 0], sizes = [1, 128], strides = [1, 1]} : vector<8x384xf32> to vector<1x128xf32>
    %25 = vector.extract_strided_slice %18 {offsets = [3, 128], sizes = [1, 128], strides = [1, 1]} : vector<8x384xf32> to vector<1x128xf32>
    %26 = vector.extract_strided_slice %18 {offsets = [3, 256], sizes = [1, 128], strides = [1, 1]} : vector<8x384xf32> to vector<1x128xf32>
    %c0_9 = arith.constant 0 : index
    %c0_10 = arith.constant 0 : index
    %27 = vector.load %arg16[%c0_9, %c0_10] : memref<8x128xf32, #tpu.memory_space<vmem>>, vector<8x128xf32>
    %cst = arith.constant dense<0.000000e+00> : vector<8xf32>
    %28 = vector.multi_reduction <add>, %27, %cst [1] : vector<8x128xf32> to vector<8xf32>
    %29 = vector.shape_cast %28 : vector<8xf32> to vector<8x1xf32>
    %cst_11 = arith.constant 0.010416667 : f32
    %30 = vector.broadcast %cst_11 : f32 to vector<8x1xf32>
    %31 = arith.mulf %29, %30 : vector<8x1xf32>
    %32 = vector.broadcast %31 : vector<8x1xf32> to vector<8x128xf32>
    %33 = arith.subf %27, %32 : vector<8x128xf32>
    %34 = vector.broadcast %4 : vector<1x128xf32> to vector<8x128xf32>
    %35 = arith.mulf %33, %34 : vector<8x128xf32>
    %36 = arith.mulf %35, %35 : vector<8x128xf32>
    %cst_12 = arith.constant dense<0.000000e+00> : vector<8xf32>
    %37 = vector.multi_reduction <add>, %36, %cst_12 [1] : vector<8x128xf32> to vector<8xf32>
    %38 = vector.shape_cast %37 : vector<8xf32> to vector<8x1xf32>
    %cst_13 = arith.constant 0.010416667 : f32
    %39 = vector.broadcast %cst_13 : f32 to vector<8x1xf32>
    %40 = arith.mulf %38, %39 : vector<8x1xf32>
    %41 = vector.broadcast %31 : vector<8x1xf32> to vector<8x128xf32>
    %42 = arith.subf %27, %41 : vector<8x128xf32>
    %cst_14 = arith.constant 9.99999974E-6 : f32
    %43 = vector.broadcast %cst_14 : f32 to vector<8x1xf32>
    %44 = arith.addf %40, %43 : vector<8x1xf32>
    %45 = math.rsqrt %44 : vector<8x1xf32>
    %46 = vector.broadcast %45 : vector<8x1xf32> to vector<8x128xf32>
    %47 = arith.mulf %42, %46 : vector<8x128xf32>
    %48 = vector.broadcast %21 : vector<1x128xf32> to vector<8x128xf32>
    %49 = arith.mulf %47, %48 : vector<8x128xf32>
    %50 = vector.broadcast %22 : vector<1x128xf32> to vector<8x128xf32>
    %51 = arith.addf %49, %50 : vector<8x128xf32>
    %c0_15 = arith.constant 0 : index
    %c0_16 = arith.constant 0 : index
    %c0_17 = arith.constant 0 : index
    %52 = vector.load %arg9[%c0_15, %c0_16, %c0_17] : memref<1x128x384xbf16, #tpu.memory_space<vmem>>, vector<1x128x384xbf16>
    %53 = vector.shape_cast %52 : vector<1x128x384xbf16> to vector<128x384xbf16>
    %54 = arith.truncf %51 : vector<8x128xf32> to vector<8x128xbf16>
    %cst_18 = arith.constant dense<0.000000e+00> : vector<8x384xf32>
    %55 = tpu.matmul %54, %53, %cst_18 {dimension_numbers = #tpu.dot_dimension_numbers<[1], [0], [0], [1], [0, 0, 1, 1], [], []>} : vector<8x128xbf16>, vector<128x384xbf16>, vector<8x384xf32> -> vector<8x384xf32>
    %56 = vector.broadcast %19 : vector<1x384xf32> to vector<8x384xf32>
    %57 = arith.addf %55, %56 : vector<8x384xf32>
    %58 = vector.extract_strided_slice %57 {offsets = [0, 0], sizes = [8, 128], strides = [1, 1]} : vector<8x384xf32> to vector<8x128xf32>
    %59 = vector.extract_strided_slice %57 {offsets = [0, 128], sizes = [8, 128], strides = [1, 1]} : vector<8x384xf32> to vector<8x128xf32>
    %60 = vector.extract_strided_slice %57 {offsets = [0, 256], sizes = [8, 128], strides = [1, 1]} : vector<8x384xf32> to vector<8x128xf32>
    %61 = tpu.concatenate %59, %59, %59, %59, %59, %59, %59, %59, %59, %59, %59, %59, %59, %59, %59, %59 in 0 : vector<8x128xf32>, vector<8x128xf32>, vector<8x128xf32>, vector<8x128xf32>, vector<8x128xf32>, vector<8x128xf32>, vector<8x128xf32>, vector<8x128xf32>, vector<8x128xf32>, vector<8x128xf32>, vector<8x128xf32>, vector<8x128xf32>, vector<8x128xf32>, vector<8x128xf32>, vector<8x128xf32>, vector<8x128xf32> -> vector<128x128xf32>
    %62 = arith.mulf %61, %13 : vector<128x128xf32>
    %63 = arith.truncf %58 : vector<8x128xf32> to vector<8x128xbf16>
    %64 = arith.truncf %62 : vector<128x128xf32> to vector<128x128xbf16>
    %cst_19 = arith.constant dense<0.000000e+00> : vector<8x128xf32>
    %65 = tpu.matmul %63, %64, %cst_19 {dimension_numbers = #tpu.dot_dimension_numbers<[1], [1], [0], [0], [0, 0, 1, 0], [], []>} : vector<8x128xbf16>, vector<128x128xbf16>, vector<8x128xf32> -> vector<8x128xf32>
    %66 = arith.addf %65, %12 : vector<8x128xf32>
    %cst_20 = arith.constant dense<0xFF800000> : vector<8xf32>
    %67 = vector.multi_reduction <maximumf>, %66, %cst_20 [1] : vector<8x128xf32> to vector<8xf32>
    %68 = vector.shape_cast %67 : vector<8xf32> to vector<8x1xf32>
    %69 = vector.broadcast %68 : vector<8x1xf32> to vector<8x128xf32>
    %70 = arith.subf %66, %69 : vector<8x128xf32>
    %71 = math.exp %70 : vector<8x128xf32>
    %cst_21 = arith.constant dense<0.000000e+00> : vector<8x128xf32>
    %72 = tpu.matmul %71, %13, %cst_21 {dimension_numbers = #tpu.dot_dimension_numbers<[1], [0], [0], [1], [0, 0, 1, 1], [], []>} : vector<8x128xf32>, vector<128x128xf32>, vector<8x128xf32> -> vector<8x128xf32>
    %73 = tpu.reciprocal %72 {approx = true} : vector<8x128xf32> -> vector<8x128xf32>
    %74 = arith.mulf %71, %73 : vector<8x128xf32>
    %75 = tpu.concatenate %60, %60, %60, %60, %60, %60, %60, %60, %60, %60, %60, %60, %60, %60, %60, %60 in 0 : vector<8x128xf32>, vector<8x128xf32>, vector<8x128xf32>, vector<8x128xf32>, vector<8x128xf32>, vector<8x128xf32>, vector<8x128xf32>, vector<8x128xf32>, vector<8x128xf32>, vector<8x128xf32>, vector<8x128xf32>, vector<8x128xf32>, vector<8x128xf32>, vector<8x128xf32>, vector<8x128xf32>, vector<8x128xf32> -> vector<128x128xf32>
    %76 = arith.mulf %75, %13 : vector<128x128xf32>
    %77 = arith.truncf %74 : vector<8x128xf32> to vector<8x128xbf16>
    %78 = arith.truncf %76 : vector<128x128xf32> to vector<128x128xbf16>
    %cst_22 = arith.constant dense<0.000000e+00> : vector<8x128xf32>
    %79 = tpu.matmul %77, %78, %cst_22 {dimension_numbers = #tpu.dot_dimension_numbers<[1], [0], [0], [1], [0, 0, 1, 1], [], []>} : vector<8x128xbf16>, vector<128x128xbf16>, vector<8x128xf32> -> vector<8x128xf32>
    %c0_23 = arith.constant 0 : index
    %c0_24 = arith.constant 0 : index
    %c0_25 = arith.constant 0 : index
    %80 = vector.load %arg10[%c0_23, %c0_24, %c0_25] : memref<1x128x128xbf16, #tpu.memory_space<vmem>>, vector<1x128x128xbf16>
    %81 = vector.shape_cast %80 : vector<1x128x128xbf16> to vector<128x128xbf16>
    %82 = arith.truncf %79 : vector<8x128xf32> to vector<8x128xbf16>
    %cst_26 = arith.constant dense<0.000000e+00> : vector<8x128xf32>
    %83 = tpu.matmul %82, %81, %cst_26 {dimension_numbers = #tpu.dot_dimension_numbers<[1], [0], [0], [1], [0, 0, 1, 1], [], []>} : vector<8x128xbf16>, vector<128x128xbf16>, vector<8x128xf32> -> vector<8x128xf32>
    %84 = arith.addf %27, %83 : vector<8x128xf32>
    %85 = vector.broadcast %25 : vector<1x128xf32> to vector<8x128xf32>
    %86 = arith.addf %84, %85 : vector<8x128xf32>
    %cst_27 = arith.constant dense<0.000000e+00> : vector<8xf32>
    %87 = vector.multi_reduction <add>, %86, %cst_27 [1] : vector<8x128xf32> to vector<8xf32>
    %88 = vector.shape_cast %87 : vector<8xf32> to vector<8x1xf32>
    %cst_28 = arith.constant 0.010416667 : f32
    %89 = vector.broadcast %cst_28 : f32 to vector<8x1xf32>
    %90 = arith.mulf %88, %89 : vector<8x1xf32>
    %91 = vector.broadcast %90 : vector<8x1xf32> to vector<8x128xf32>
    %92 = arith.subf %86, %91 : vector<8x128xf32>
    %93 = vector.broadcast %4 : vector<1x128xf32> to vector<8x128xf32>
    %94 = arith.mulf %92, %93 : vector<8x128xf32>
    %95 = arith.mulf %94, %94 : vector<8x128xf32>
    %cst_29 = arith.constant dense<0.000000e+00> : vector<8xf32>
    %96 = vector.multi_reduction <add>, %95, %cst_29 [1] : vector<8x128xf32> to vector<8xf32>
    %97 = vector.shape_cast %96 : vector<8xf32> to vector<8x1xf32>
    %cst_30 = arith.constant 0.010416667 : f32
    %98 = vector.broadcast %cst_30 : f32 to vector<8x1xf32>
    %99 = arith.mulf %97, %98 : vector<8x1xf32>
    %100 = vector.broadcast %90 : vector<8x1xf32> to vector<8x128xf32>
    %101 = arith.subf %86, %100 : vector<8x128xf32>
    %cst_31 = arith.constant 9.99999974E-6 : f32
    %102 = vector.broadcast %cst_31 : f32 to vector<8x1xf32>
    %103 = arith.addf %99, %102 : vector<8x1xf32>
    %104 = math.rsqrt %103 : vector<8x1xf32>
    %105 = vector.broadcast %104 : vector<8x1xf32> to vector<8x128xf32>
    %106 = arith.mulf %101, %105 : vector<8x128xf32>
    %107 = vector.broadcast %23 : vector<1x128xf32> to vector<8x128xf32>
    %108 = arith.mulf %106, %107 : vector<8x128xf32>
    %109 = vector.broadcast %24 : vector<1x128xf32> to vector<8x128xf32>
    %110 = arith.addf %108, %109 : vector<8x128xf32>
    %c0_32 = arith.constant 0 : index
    %c0_33 = arith.constant 0 : index
    %c0_34 = arith.constant 0 : index
    %111 = vector.load %arg11[%c0_32, %c0_33, %c0_34] : memref<1x128x384xbf16, #tpu.memory_space<vmem>>, vector<1x128x384xbf16>
    %112 = vector.shape_cast %111 : vector<1x128x384xbf16> to vector<128x384xbf16>
    %113 = arith.truncf %110 : vector<8x128xf32> to vector<8x128xbf16>
    %cst_35 = arith.constant dense<0.000000e+00> : vector<8x384xf32>
    %114 = tpu.matmul %113, %112, %cst_35 {dimension_numbers = #tpu.dot_dimension_numbers<[1], [0], [0], [1], [0, 0, 1, 1], [], []>} : vector<8x128xbf16>, vector<128x384xbf16>, vector<8x384xf32> -> vector<8x384xf32>
    %115 = vector.broadcast %20 : vector<1x384xf32> to vector<8x384xf32>
    %116 = arith.addf %114, %115 : vector<8x384xf32>
    %cst_36 = arith.constant 5.000000e-01 : f32
    %117 = vector.broadcast %cst_36 : f32 to vector<8x384xf32>
    %118 = arith.mulf %117, %116 : vector<8x384xf32>
    %cst_37 = arith.constant 4.471500e-02 : f32
    %119 = vector.broadcast %cst_37 : f32 to vector<8x384xf32>
    %120 = arith.mulf %119, %116 : vector<8x384xf32>
    %121 = arith.mulf %120, %116 : vector<8x384xf32>
    %122 = arith.mulf %121, %116 : vector<8x384xf32>
    %123 = arith.addf %116, %122 : vector<8x384xf32>
    %cst_38 = arith.constant 0.797884583 : f32
    %124 = vector.broadcast %cst_38 : f32 to vector<8x384xf32>
    %125 = arith.mulf %124, %123 : vector<8x384xf32>
    %126 = math.tanh %125 : vector<8x384xf32>
    %cst_39 = arith.constant 1.000000e+00 : f32
    %127 = vector.broadcast %cst_39 : f32 to vector<8x384xf32>
    %128 = arith.addf %127, %126 : vector<8x384xf32>
    %129 = arith.mulf %118, %128 : vector<8x384xf32>
    %c0_40 = arith.constant 0 : index
    %c0_41 = arith.constant 0 : index
    %c0_42 = arith.constant 0 : index
    %130 = vector.load %arg12[%c0_40, %c0_41, %c0_42] : memref<1x384x128xbf16, #tpu.memory_space<vmem>>, vector<1x384x128xbf16>
    %131 = vector.shape_cast %130 : vector<1x384x128xbf16> to vector<384x128xbf16>
    %132 = arith.truncf %129 : vector<8x384xf32> to vector<8x384xbf16>
    %cst_43 = arith.constant dense<0.000000e+00> : vector<8x128xf32>
    %133 = tpu.matmul %132, %131, %cst_43 {dimension_numbers = #tpu.dot_dimension_numbers<[1], [0], [0], [1], [0, 0, 1, 1], [], []>} : vector<8x384xbf16>, vector<384x128xbf16>, vector<8x128xf32> -> vector<8x128xf32>
    %134 = vector.broadcast %26 : vector<1x128xf32> to vector<8x128xf32>
    %135 = arith.addf %133, %134 : vector<8x128xf32>
    %136 = arith.addf %86, %135 : vector<8x128xf32>
    %c0_44 = arith.constant 0 : index
    %c0_45 = arith.constant 0 : index
    %137 = vector.load %arg16[%c0_44, %c0_45] : memref<8x128xf32, #tpu.memory_space<vmem>>, vector<8x128xf32>
    tpu.vector_store %arg16[%c0_44, %c0_45], %136 {strides = array<i32>} : memref<8x128xf32, #tpu.memory_space<vmem>>, vector<8x128xf32>,
    %c11_i32 = arith.constant 11 : i32
    %138 = arith.cmpi eq, %arg0, %c11_i32 : i32
    %139 = arith.extui %138 : i1 to i32
    %c0_i32_46 = arith.constant 0 : i32
    %140 = arith.cmpi ne, %139, %c0_i32_46 : i32
    scf.if %140 {
      %cst_47 = arith.constant dense<0.000000e+00> : vector<8xf32>
      %141 = vector.multi_reduction <add>, %136, %cst_47 [1] : vector<8x128xf32> to vector<8xf32>
      %142 = vector.shape_cast %141 : vector<8xf32> to vector<8x1xf32>
      %cst_48 = arith.constant 0.010416667 : f32
      %143 = vector.broadcast %cst_48 : f32 to vector<8x1xf32>
      %144 = arith.mulf %142, %143 : vector<8x1xf32>
      %145 = vector.broadcast %144 : vector<8x1xf32> to vector<8x128xf32>
      %146 = arith.subf %136, %145 : vector<8x128xf32>
      %147 = vector.broadcast %4 : vector<1x128xf32> to vector<8x128xf32>
      %148 = arith.mulf %146, %147 : vector<8x128xf32>
      %149 = arith.mulf %148, %148 : vector<8x128xf32>
      %cst_49 = arith.constant dense<0.000000e+00> : vector<8xf32>
      %150 = vector.multi_reduction <add>, %149, %cst_49 [1] : vector<8x128xf32> to vector<8xf32>
      %151 = vector.shape_cast %150 : vector<8xf32> to vector<8x1xf32>
      %cst_50 = arith.constant 0.010416667 : f32
      %152 = vector.broadcast %cst_50 : f32 to vector<8x1xf32>
      %153 = arith.mulf %151, %152 : vector<8x1xf32>
      %154 = vector.broadcast %144 : vector<8x1xf32> to vector<8x128xf32>
      %155 = arith.subf %136, %154 : vector<8x128xf32>
      %cst_51 = arith.constant 9.99999974E-6 : f32
      %156 = vector.broadcast %cst_51 : f32 to vector<8x1xf32>
      %157 = arith.addf %153, %156 : vector<8x1xf32>
      %158 = math.rsqrt %157 : vector<8x1xf32>
      %159 = vector.broadcast %158 : vector<8x1xf32> to vector<8x128xf32>
      %160 = arith.mulf %155, %159 : vector<8x128xf32>
      %161 = vector.broadcast %2 : vector<1x128xf32> to vector<8x128xf32>
      %162 = arith.mulf %160, %161 : vector<8x128xf32>
      %163 = vector.broadcast %3 : vector<1x128xf32> to vector<8x128xf32>
      %164 = arith.addf %162, %163 : vector<8x128xf32>
      %165 = arith.addf %164, %11 : vector<8x128xf32>
      %c0_52 = arith.constant 0 : index
      %c0_53 = arith.constant 0 : index
      %166 = vector.load %arg7[%c0_52, %c0_53] : memref<128x128xf32, #tpu.memory_space<vmem>>, vector<128x128xf32>
      %cst_54 = arith.constant dense<0.000000e+00> : vector<8x128xf32>
      %167 = tpu.matmul %165, %166, %cst_54 {dimension_numbers = #tpu.dot_dimension_numbers<[1], [0], [0], [1], [0, 0, 1, 1], [], []>} : vector<8x128xf32>, vector<128x128xf32>, vector<8x128xf32> -> vector<8x128xf32>
      %168 = vector.broadcast %6 : vector<1x128xf32> to vector<8x128xf32>
      %169 = arith.addf %167, %168 : vector<8x128xf32>
      %cst_55 = arith.constant dense<0.000000e+00> : vector<8xf32>
      %170 = vector.multi_reduction <add>, %169, %cst_55 [1] : vector<8x128xf32> to vector<8xf32>
      %171 = vector.shape_cast %170 : vector<8xf32> to vector<8x1xf32>
      %cst_56 = arith.constant 0.010416667 : f32
      %172 = vector.broadcast %cst_56 : f32 to vector<8x1xf32>
      %173 = arith.mulf %171, %172 : vector<8x1xf32>
      %174 = vector.broadcast %173 : vector<8x1xf32> to vector<8x128xf32>
      %175 = arith.subf %169, %174 : vector<8x128xf32>
      %176 = vector.broadcast %4 : vector<1x128xf32> to vector<8x128xf32>
      %177 = arith.mulf %175, %176 : vector<8x128xf32>
      %178 = arith.mulf %177, %177 : vector<8x128xf32>
      %cst_57 = arith.constant dense<0.000000e+00> : vector<8xf32>
      %179 = vector.multi_reduction <add>, %178, %cst_57 [1] : vector<8x128xf32> to vector<8xf32>
      %180 = vector.shape_cast %179 : vector<8xf32> to vector<8x1xf32>
      %cst_58 = arith.constant 0.010416667 : f32
      %181 = vector.broadcast %cst_58 : f32 to vector<8x1xf32>
      %182 = arith.mulf %180, %181 : vector<8x1xf32>
      %183 = vector.broadcast %173 : vector<8x1xf32> to vector<8x128xf32>
      %184 = arith.subf %169, %183 : vector<8x128xf32>
      %cst_59 = arith.constant 9.99999974E-6 : f32
      %185 = vector.broadcast %cst_59 : f32 to vector<8x1xf32>
      %186 = arith.addf %182, %185 : vector<8x1xf32>
      %187 = math.rsqrt %186 : vector<8x1xf32>
      %188 = vector.broadcast %187 : vector<8x1xf32> to vector<8x128xf32>
      %189 = arith.mulf %184, %188 : vector<8x128xf32>
      %190 = vector.broadcast %7 : vector<1x128xf32> to vector<8x128xf32>
      %191 = arith.mulf %189, %190 : vector<8x128xf32>
      %192 = vector.broadcast %8 : vector<1x128xf32> to vector<8x128xf32>
      %193 = arith.addf %191, %192 : vector<8x128xf32>
      %cst_60 = arith.constant 5.000000e-01 : f32
      %194 = vector.broadcast %cst_60 : f32 to vector<8x128xf32>
      %195 = arith.mulf %194, %193 : vector<8x128xf32>
      %cst_61 = arith.constant 4.471500e-02 : f32
      %196 = vector.broadcast %cst_61 : f32 to vector<8x128xf32>
      %197 = arith.mulf %196, %193 : vector<8x128xf32>
      %198 = arith.mulf %197, %193 : vector<8x128xf32>
      %199 = arith.mulf %198, %193 : vector<8x128xf32>
      %200 = arith.addf %193, %199 : vector<8x128xf32>
      %cst_62 = arith.constant 0.797884583 : f32
      %201 = vector.broadcast %cst_62 : f32 to vector<8x128xf32>
      %202 = arith.mulf %201, %200 : vector<8x128xf32>
      %203 = math.tanh %202 : vector<8x128xf32>
      %cst_63 = arith.constant 1.000000e+00 : f32
      %204 = vector.broadcast %cst_63 : f32 to vector<8x128xf32>
      %205 = arith.addf %204, %203 : vector<8x128xf32>
      %206 = arith.mulf %195, %205 : vector<8x128xf32>
      %c0_64 = arith.constant 0 : index
      %c0_65 = arith.constant 0 : index
      %207 = vector.load %arg8[%c0_64, %c0_65] : memref<128x256xf32, #tpu.memory_space<vmem>>, vector<128x256xf32>
      %cst_66 = arith.constant dense<0.000000e+00> : vector<8x256xf32>
      %208 = tpu.matmul %206, %207, %cst_66 {dimension_numbers = #tpu.dot_dimension_numbers<[1], [0], [0], [1], [0, 0, 1, 1], [], []>} : vector<8x128xf32>, vector<128x256xf32>, vector<8x256xf32> -> vector<8x256xf32>
      %209 = vector.broadcast %9 : vector<1x256xf32> to vector<8x256xf32>
      %210 = arith.addf %208, %209 : vector<8x256xf32>
      %c0_67 = arith.constant 0 : index
      %c0_68 = arith.constant 0 : index
      %211 = vector.load %arg15[%c0_67, %c0_68] : memref<8x256xf32, #tpu.memory_space<vmem>>, vector<8x256xf32>
      tpu.vector_store %arg15[%c0_67, %c0_68], %210 {strides = array<i32>} : memref<8x256xf32, #tpu.memory_space<vmem>>, vector<8x256xf32>,
    } else {
    }
    return
  }
  func.func @transform_0(%arg0: i32) -> (i32, i32) {
    %c0_i32 = arith.constant 0 : i32
    %c0_i32_0 = arith.constant 0 : i32
    %c0_i32_1 = arith.constant 0 : i32
    return %c0_i32, %c0_i32_0 : i32, i32
  }
  func.func @transform_1(%arg0: i32) -> (i32, i32) {
    %c0_i32 = arith.constant 0 : i32
    %c0_i32_0 = arith.constant 0 : i32
    %c0_i32_1 = arith.constant 0 : i32
    return %c0_i32, %c0_i32_0 : i32, i32
  }
  func.func @transform_2(%arg0: i32) -> (i32, i32) {
    %c0_i32 = arith.constant 0 : i32
    %c0_i32_0 = arith.constant 0 : i32
    %c0_i32_1 = arith.constant 0 : i32
    return %c0_i32, %c0_i32_0 : i32, i32
  }
  func.func @transform_3(%arg0: i32) -> (i32, i32) {
    %c0_i32 = arith.constant 0 : i32
    %c0_i32_0 = arith.constant 0 : i32
    %c0_i32_1 = arith.constant 0 : i32
    return %c0_i32, %c0_i32_0 : i32, i32
  }
  func.func @transform_4(%arg0: i32) -> (i32, i32) {
    %c0_i32 = arith.constant 0 : i32
    %c0_i32_0 = arith.constant 0 : i32
    %c0_i32_1 = arith.constant 0 : i32
    return %c0_i32, %c0_i32_0 : i32, i32
  }
  func.func @transform_5(%arg0: i32) -> (i32, i32) {
    %c0_i32 = arith.constant 0 : i32
    %c0_i32_0 = arith.constant 0 : i32
    %c0_i32_1 = arith.constant 0 : i32
    return %c0_i32, %c0_i32_0 : i32, i32
  }
  func.func @transform_6(%arg0: i32) -> (i32, i32) {
    %c0_i32 = arith.constant 0 : i32
    %c0_i32_0 = arith.constant 0 : i32
    %c0_i32_1 = arith.constant 0 : i32
    return %c0_i32, %c0_i32_0 : i32, i32
  }
  func.func @transform_7(%arg0: i32) -> (i32, i32) {
    %c0_i32 = arith.constant 0 : i32
    %c0_i32_0 = arith.constant 0 : i32
    %c0_i32_1 = arith.constant 0 : i32
    return %c0_i32, %c0_i32_0 : i32, i32
  }
  func.func @transform_8(%arg0: i32) -> (i32, i32, i32) {
    %c0_i32 = arith.constant 0 : i32
    %c0_i32_0 = arith.constant 0 : i32
    %c0_i32_1 = arith.constant 0 : i32
    return %arg0, %c0_i32, %c0_i32_0 : i32, i32, i32
  }
  func.func @transform_9(%arg0: i32) -> (i32, i32, i32) {
    %c0_i32 = arith.constant 0 : i32
    %c0_i32_0 = arith.constant 0 : i32
    %c0_i32_1 = arith.constant 0 : i32
    return %arg0, %c0_i32, %c0_i32_0 : i32, i32, i32
  }
  func.func @transform_10(%arg0: i32) -> (i32, i32, i32) {
    %c0_i32 = arith.constant 0 : i32
    %c0_i32_0 = arith.constant 0 : i32
    %c0_i32_1 = arith.constant 0 : i32
    return %arg0, %c0_i32, %c0_i32_0 : i32, i32, i32
  }
  func.func @transform_11(%arg0: i32) -> (i32, i32, i32) {
    %c0_i32 = arith.constant 0 : i32
    %c0_i32_0 = arith.constant 0 : i32
    %c0_i32_1 = arith.constant 0 : i32
    return %arg0, %c0_i32, %c0_i32_0 : i32, i32, i32
  }
  func.func @transform_12(%arg0: i32) -> (i32, i32, i32) {
    %c0_i32 = arith.constant 0 : i32
    %c0_i32_0 = arith.constant 0 : i32
    %c0_i32_1 = arith.constant 0 : i32
    return %arg0, %c0_i32, %c0_i32_0 : i32, i32, i32
  }
  func.func @transform_13(%arg0: i32) -> (i32, i32) {
    %c0_i32 = arith.constant 0 : i32
    %c0_i32_0 = arith.constant 0 : i32
    %c0_i32_1 = arith.constant 0 : i32
    return %c0_i32, %c0_i32_0 : i32, i32
  }
  func.func @transform_14(%arg0: i32) -> (i32, i32) {
    %c0_i32 = arith.constant 0 : i32
    %c0_i32_0 = arith.constant 0 : i32
    %c0_i32_1 = arith.constant 0 : i32
    return %c0_i32, %c0_i32_0 : i32, i32
  }
}

</mosaic_0001>

<bundles_post_ra>
// kernel: tile.8
= control target key start
LH: loop header
LB: loop body
LE: loop exit
PB: predicated region body
PF: predicated region fallthrough
CT: control target
= control target key end

     0   :  { %s22_s0 = inlined_call_operand.vmem [shape: f32[4], index: 0, kind: input, shape index: {}]   ;;  %s23_s1 = inlined_call_operand.vmem [shape: f32[2,4], index: 1, kind: output, shape index: {}]  }
   0x1   :  { %v4_v0 = vld [vmem:[%s22_s0] ss:$0 sm:$0xff] }
   0x2   :  { %5 = vst [vmem:[%s23_s1] sm:$0x3] %v4_v0 }

// kernel: mae_forward.1
= control target key start
LH: loop header
LB: loop body
LE: loop exit
PB: predicated region body
PF: predicated region fallthrough
CT: control target
= control target key end

     0   :  { %s4393_s0 = inlined_call_operand.vmem [shape: f32[8,256], index: 0, kind: input, shape index: {}]   ;;  %s4394_s1 = inlined_call_operand.vmem [shape: f32[8,128], index: 1, kind: input, shape index: {}]   ;;  %s4395_s2 = inlined_call_operand.hbm [shape: f32[256,128], index: 2, kind: input, shape index: {}]   ;;  %s4396_s3 = inlined_call_operand.hbm [shape: f32[8,256], index: 3, kind: input, shape index: {}]   ;;  %s4397_s4 = inlined_call_operand.hbm [shape: f32[8,256], index: 4, kind: input, shape index: {}]   ;;  %s4398_s5 = inlined_call_operand.hbm [shape: f32[128,128], index: 5, kind: input, shape index: {}]   ;;  %s4399_s6 = inlined_call_operand.hbm [shape: f32[128,128], index: 6, kind: input, shape index: {}]   ;;  %s4400_s7 = inlined_call_operand.hbm [shape: f32[128,256], index: 7, kind: input, shape index: {}]   ;;  %s4401_s8 = inlined_call_operand.hbm [shape: bf16[12,128,384], index: 8, kind: input, shape index: {}]   ;;  %s4402_s9 = inlined_call_operand.hbm [shape: bf16[12,128,128], index: 9, kind: input, shape index: {}]   ;;  %s4403_s10 = inlined_call_operand.hbm [shape: bf16[12,128,384], index: 10, kind: input, shape index: {}]   ;;  %s4404_s11 = inlined_call_operand.hbm [shape: bf16[12,384,128], index: 11, kind: input, shape index: {}]   ;;  %s4405_s12 = inlined_call_operand.hbm [shape: f32[12,8,384], index: 12, kind: input, shape index: {}]   ;;  %s4406_s13 = inlined_call_operand.hbm [shape: f32[8,128], index: 13, kind: output, shape index: {0}]   ;;  %s4407_s14 = inlined_call_operand.vmem [shape: f32[8,256], index: 14, kind: output, shape index: {1}]  }
   0x1   :  { %4436 = sst [smem:[#allocation32_spill]] %s4393_s0 }
   0x2   :  { %4437 = sst [smem:[#allocation33_spill]] %s4394_s1 }
   0x3   :  { %4438 = sst [smem:[#allocation34_spill]] %s4395_s2 }
   0x4   :  { %4439 = sst [smem:[#allocation35_spill]] %s4396_s3 }
   0x5   :  { %4440 = sst [smem:[#allocation36_spill]] %s4401_s8 }
   0x6   :  { %4441 = sst [smem:[#allocation37_spill]] %s4406_s13 }
   0x7   :  { %4442 = sst [smem:[#allocation38_spill]] %s4407_s14 }
   0x8   :  { %20 = vsyncpa [#allocation4], 0 }
   0x9   :  { %21 = vsyncpa [#allocation7], 0 }
   0xa   :  { %22 = vsyncpa [#allocation10], 0 }
   0xb   :  { %23 = vsyncpa [#allocation13], 0 }
   0xc   :  { %24 = vsyncpa [#allocation5], 0  ;;  %s3677_s29 = smov 0   ;;  %s3679_s30 = smov 0  }
   0xd   :  { %s3681_s15 = smov 0   ;;  %s3683_s16 = smov 0  }
   0xe LB: > { %4443 = sst [smem:[#allocation26_spill]] %s3567_s30  ;;  %s3696_s17 = sadd.s32 4294967295, %s3575_s16   ;;  %s3575_s16 = sphi %s3683_s16, %s4488_s16   ;;  %s3571_s15 = sphi %s3681_s15, %s4491_s15   ;;  %s3567_s30 = sphi %s3679_s30, %s4490_s30   ;;  %s3563_s29 = sphi %s3677_s29, %s4489_s29  }
   0xf   : > { %4444 = sst [smem:[#allocation27_spill]] %s3571_s15  ;;  %p218_p0 = scmp.ne.s32.totalorder %s3567_s30, %s3563_s29 }
  0x10   : > { %4445 = sst [smem:[#allocation28_spill]] %s3696_s17  ;;  %p4419_p1 = scmp.eq.s32.totalorder %s3696_s17, 0 }
  0x11   : > { %p2490_p2 = scmp.ge.s32.totalorder %s3575_s16, 1  ;;  %p375_p3 = scmp.lt.s32.totalorder %s3575_s16, 13 }
  0x12   : > { %p3705_p5 = por %p4419_p1, %p218_p0  ;;  %s3577_s20 = smov [#allocation3]  }
  0x13   : > { %p3709_p6 = pnand %p2490_p2, %p375_p3  ;;  %s393_s21 = sshll.u32 %s3577_s20, 4  ;;  %s394_s21 = int_to_ptr.vmem [resolvable:$true] %s393_s21 }
  0x14   : > { %s4446_s18 = scalar_select %p3705_p5, 1, 0 }
  0x15   : > { %s4448_s19 = scalar_select %p3709_p6, 1, 0 }
  0x16   : > { %4447 = sst [smem:[#allocation29_spill]] %s4446_s18  ;;  %p2983_p7 = pneg %p3709_p6 }
  0x17   : > { %s3722_s23 = sadd.s32 1, %s3575_s16   ;;  %s205_s24 = sadd.s32 1, %s3571_s15 }
  0x18   : > { %p3717_p8 = pnand %p2983_p7, %p4419_p1  ;;  %4450 = sst [smem:[#allocation30_spill]] %s3722_s23 }
  0x19   : > { %s202_s25 = ssub.s32 %s3575_s16, %s3722_s23  ;;  %s3212_s27 = scalar_lea.vmem %s394_s21, 4096 }
  0x1a   : > { %s4449_s22 = scalar_select %p3717_p8, 1, 0 }
  0x1b   : > { %p3729_p9 = pneg %p3717_p8  ;;  %p3213_p10 = scmp.ne.s32.totalorder %s394_s21, %s3212_s27 }
  0x1c   : > { %p3220_p13 = scmp.lt.s32.totalorder %s394_s21, %s394_s21  ;;  %p3221_p0 = scmp.lt.s32.totalorder %s3212_s27, %s3212_s27 }
  0x1d   : > { %s4451_s26 = scalar_select %p3729_p9, 1, 0 }
  0x1e   : > { %p3215_p11 = pnand %p3213_p10, %p3729_p9  ;;  %p3222_p2 = por %p3221_p0, %p3220_p13 }
  0x20   : > { %p3216_p12 = pneg %p3215_p11 }
  0x22   : > { %p3223_p3 = pnand %p3222_p2, %p3216_p12 }
  0x24   : > { %3226 = shalt.err (!%p3223_p3)
}
  0x25   : > { %s4412_s28 = smov 128   ;;  %s4414_s29 = smov 8  }
  0x26   : > { %s4452_s2 = sld [smem:[#allocation34_spill]]  ;;  %p203_p7 = scmp.eq.s32.totalorder %s202_s25, 0 }
  0x27   : > { %p212_p10 = scmp.ne.s32.totalorder %s3571_s15, %s3567_s30  ;;  %p213_p11 = scmp.eq.s32.totalorder %s3575_s16, 0 }
  0x28   : > { %p3024_p12 = scmp.lt.s32.totalorder %s3575_s16, 12  ;;  %s468_s13 = sand.u32 1, %s3575_s16  }
  0x29   : > { %s3748_s23 = scalar_select %p203_p7, %s3571_s15, %s205_s24  }
  0x2a   : > { %p214_p13 = por %p213_p11, %p212_p10  ;;  %s3752_s14 = sand.u32 1, %s3571_s15  }
  0x2b   : > { %4453 = sst [smem:[#allocation31_spill]] %s3748_s23  ;;  %s3755_s1 = smul.u32 192, %s3752_s14 }
  0x2c   : > { %2986 = dma.hbm_to_vmem [thread:$0]  (!%p3717_p8), %s4452_s2, 4096, %s394_s21, [#allocation4], %s4412_s28, %s4412_s28, %s4414_s29  }
  0x2d   : > { %p3757_p0 = pnand %p3024_p12, %p214_p13  ;;  %s3762_s21 = smul.u32 3072, %s3575_s16 }
  0x2e   : > { %s4455_s8 = sld [smem:[#allocation36_spill]]  ;;  %s472_s27 = scalar_lea.vmem [#allocation14], %s3755_s1 }
  0x2f   : > { %s479_s28 = sshll.u32 %s472_s27, 4  ;;  %s3773_s29 = scalar_lea.sflag [#allocation4], %s468_s13  ;;  %s3771_s28 = int_to_ptr.vmem [resolvable:$true] %s479_s28 }
  0x30   : > { %p3779_p3 = pneg %p3757_p0 }
  0x34   : > { %s3768_s24 = scalar_lea.hbm %s4455_s8, %s3762_s21  ;;  %s3232_s15 = scalar_lea.hbm %s4455_s8, 36864 }
  0x35   : > { %s3227_s2 = scalar_lea.hbm %s3768_s24, 3072  ;;  %p3233_p11 = scmp.lt.s32.totalorder %s3768_s24, %s4455_s8 }
  0x36   : > { %p3228_p2 = scmp.ne.s32.totalorder %s3768_s24, %s3227_s2  ;;  %p3234_p12 = scmp.lt.s32.totalorder %s3232_s15, %s3227_s2 }
  0x38   : > { %p3230_p7 = pnand %p3779_p3, %p3228_p2  ;;  %p3235_p13 = por %p3234_p12, %p3233_p11 }
  0x3a   : > { %p3231_p10 = pneg %p3230_p7 }
  0x3c   : > { %p3236_p4 = pnand %p3235_p13, %p3231_p10 }
  0x3e   : > { %3239 = shalt.err (!%p3236_p4)
}
  0x3f   : > { %s3240_s13 = scalar_lea.vmem %s3771_s28, 3072  ;;  %s3580_s30 = smov [#allocation14]  }
  0x40   : > { %p3241_p1 = scmp.ne.s32.totalorder %s3771_s28, %s3240_s13  ;;  %s3245_s25 = sshll.u32 %s3580_s30, 4  ;;  %s3246_s25 = int_to_ptr.vmem [resolvable:$false] %s3245_s25 }
  0x41   : > { %s3247_s20 = scalar_lea.vmem %s3246_s25, 6144  ;;  %p3248_p5 = scmp.lt.s32.totalorder %s3771_s28, %s3246_s25 }
  0x42   : > { %p3243_p2 = pnand %p3241_p1, %p3779_p3  ;;  %p3249_p6 = scmp.lt.s32.totalorder %s3247_s20, %s3240_s13 }
  0x44   : > { %p3244_p7 = pneg %p3243_p2  ;;  %p3250_p8 = por %p3249_p6, %p3248_p5 }
  0x46   : > { %p3251_p9 = pnand %p3250_p8, %p3244_p7 }
  0x48   : > { %3254 = shalt.err (!%p3251_p9)
}
  0x49   : > { %s4430_s2 = smov 192   ;;  %s4431_s15 = smov 12  }
  0x4a   : > { %3005 = dma.hbm_to_vmem [thread:$0]  (!%p3757_p0), %s3768_s24, 3072, %s3771_s28, %s3773_s29, %s4430_s2, %s4430_s2, %s4431_s15  }
  0x4b   : > { %s2499_s30 = sshll.u32 %s3752_s14, 6  ;;  %s2599_s18 = sshll.u32 %s3575_s16, 10 }
  0x4c   : > { %s3810_s25 = scalar_lea.hbm %s4402_s9, %s2599_s18  ;;  %s493_s20 = scalar_lea.vmem [#allocation15], %s2499_s30 }
  0x4d   : > { %s500_s8 = sshll.u32 %s493_s20, 4  ;;  %s3255_s17 = scalar_lea.hbm %s3810_s25, 1024  ;;  %s3812_s8 = int_to_ptr.vmem [resolvable:$true] %s500_s8 }
  0x4e   : > { %p3256_p1 = scmp.ne.s32.totalorder %s3810_s25, %s3255_s17  ;;  %s3260_s2 = scalar_lea.hbm %s4402_s9, 12288 }
  0x4f   : > { %p3261_p6 = scmp.lt.s32.totalorder %s3810_s25, %s4402_s9  ;;  %p3262_p8 = scmp.lt.s32.totalorder %s3260_s2, %s3255_s17 }
  0x50   : > { %p3258_p4 = pnand %p3256_p1, %p3779_p3 }
  0x51   : > { %p3263_p9 = por %p3262_p8, %p3261_p6 }
  0x52   : > { %p3259_p5 = pneg %p3258_p4 }
  0x54   : > { %p3264_p10 = pnand %p3263_p9, %p3259_p5 }
  0x56   : > { %3267 = shalt.err (!%p3264_p10)
}
  0x57   : > { %s3268_s30 = scalar_lea.vmem %s3812_s8, 1024  ;;  %s3583_s18 = smov [#allocation15]  }
  0x58   : > { %p3269_p11 = scmp.ne.s32.totalorder %s3812_s8, %s3268_s30  ;;  %s3273_s13 = sshll.u32 %s3583_s18, 4  ;;  %s3274_s13 = int_to_ptr.vmem [resolvable:$false] %s3273_s13 }
  0x59   : > { %s3275_s20 = scalar_lea.vmem %s3274_s13, 2048  ;;  %p3276_p2 = scmp.lt.s32.totalorder %s3812_s8, %s3274_s13 }
  0x5a   : > { %p3271_p12 = pnand %p3269_p11, %p3779_p3  ;;  %p3277_p7 = scmp.lt.s32.totalorder %s3275_s20, %s3268_s30 }
  0x5c   : > { %p3272_p13 = pneg %p3271_p12  ;;  %p3278_p1 = por %p3277_p7, %p3276_p2 }
  0x5e   : > { %p3279_p4 = pnand %p3278_p1, %p3272_p13 }
  0x60   : > { %3282 = shalt.err (!%p3279_p4)
}
  0x61   : > { %s4432_s17 = smov 64   ;;  %s4433_s2 = smov 4  }
  0x62   : > { %3008 = dma.hbm_to_vmem [thread:$0]  (!%p3757_p0), %s3810_s25, 1024, %s3812_s8, %s3773_s29, %s4432_s17, %s4432_s17, %s4433_s2  }
  0x63   : > { %s3842_s24 = scalar_lea.hbm %s4403_s10, %s3762_s21  ;;  %s514_s27 = scalar_lea.vmem [#allocation16], %s3755_s1 }
  0x64   : > { %s521_s30 = sshll.u32 %s514_s27, 4  ;;  %s3586_s18 = smov [#allocation6]   ;;  %s3845_s30 = int_to_ptr.vmem [resolvable:$true] %s521_s30 }
  0x65   : > { %s3847_s13 = sshll.u32 %s3586_s18, 4  ;;  %s3283_s20 = scalar_lea.hbm %s3842_s24, 3072  ;;  %s408_s13 = int_to_ptr.vmem [resolvable:$true] %s3847_s13 }
  0x66   : > { %p3284_p5 = scmp.ne.s32.totalorder %s3842_s24, %s3283_s20  ;;  %s3288_s15 = scalar_lea.hbm %s4403_s10, 36864 }
  0x67   : > { %p3289_p9 = scmp.lt.s32.totalorder %s3842_s24, %s4403_s10  ;;  %p3290_p10 = scmp.lt.s32.totalorder %s3288_s15, %s3283_s20 }
  0x68   : > { %p3286_p6 = pnand %p3284_p5, %p3779_p3 }
  0x69   : > { %p3291_p11 = por %p3290_p10, %p3289_p9 }
  0x6a   : > { %p3287_p8 = pneg %p3286_p6 }
  0x6c   : > { %p3292_p12 = pnand %p3291_p11, %p3287_p8 }
  0x6e   : > { %3295 = shalt.err (!%p3292_p12)
}
  0x6f   : > { %s3296_s27 = scalar_lea.vmem %s3845_s30, 3072  ;;  %s3587_s18 = smov [#allocation16]  }
  0x70   : > { %p3297_p13 = scmp.ne.s32.totalorder %s3845_s30, %s3296_s27  ;;  %s3301_s8 = sshll.u32 %s3587_s18, 4  ;;  %s3302_s8 = int_to_ptr.vmem [resolvable:$false] %s3301_s8 }
  0x71   : > { %s3303_s25 = scalar_lea.vmem %s3302_s8, 6144  ;;  %p3304_p1 = scmp.lt.s32.totalorder %s3845_s30, %s3302_s8 }
  0x72   : > { %p3299_p2 = pnand %p3297_p13, %p3779_p3  ;;  %p3305_p4 = scmp.lt.s32.totalorder %s3303_s25, %s3296_s27 }
  0x74   : > { %p3300_p7 = pneg %p3299_p2  ;;  %p3306_p5 = por %p3305_p4, %p3304_p1 }
  0x76   : > { %p3307_p6 = pnand %p3306_p5, %p3300_p7 }
  0x78   : > { %3310 = shalt.err (!%p3307_p6)
}
  0x79   : > { %s4457_s17 = smov 12   ;;  %s4458_s20 = smov 192  }
  0x7a   : > { %3011 = dma.hbm_to_vmem [thread:$0]  (!%p3757_p0), %s3842_s24, 3072, %s3845_s30, %s3773_s29, %s4458_s20, %s4458_s20, %s4457_s17  }
  0x7b   : > { %s3322_s15 = scalar_lea.vmem %s408_s13, 256  ;;  %p4459_p9 = scmp.ne.s32.totalorder %s4451_s26, 0 }
  0x7c   : > { %p3323_p8 = scmp.ne.s32.totalorder %s408_s13, %s3322_s15  ;;  %p3330_p12 = scmp.lt.s32.totalorder %s408_s13, %s408_s13 }
  0x7d   : > { %p3331_p13 = scmp.lt.s32.totalorder %s3322_s15, %s3322_s15 }
  0x7e   : > { %p3325_p10 = pnand %p3323_p8, %p4459_p9 }
  0x7f   : > { %p3332_p2 = por %p3331_p13, %p3330_p12 }
  0x80   : > { %p3326_p11 = pneg %p3325_p10 }
  0x82   : > { %p3333_p7 = pnand %p3332_p2, %p3326_p11 }
  0x84   : > { %3336 = shalt.err (!%p3333_p7)
}
  0x85   : > { %p4460_p1 = scmp.ne.s32.totalorder %s4449_s22, 0  ;;  %s4461_s3 = sld [smem:[#allocation35_spill]] }
  0x86   : > { %s3588_s24 = smov [#allocation9]   ;;  %s3885_s25 = scalar_lea.hbm %s4404_s11, %s3762_s21 }
  0x87   : > { %s428_s30 = sshll.u32 %s3588_s24, 4  ;;  %s429_s30 = int_to_ptr.vmem [resolvable:$true] %s428_s30 }
  0x88   : > { %s3348_s17 = scalar_lea.vmem %s429_s30, 2048  ;;  %p3356_p8 = scmp.lt.s32.totalorder %s429_s30, %s429_s30 }
  0x89   : > { %p3349_p4 = scmp.ne.s32.totalorder %s429_s30, %s3348_s17  ;;  %p3357_p10 = scmp.lt.s32.totalorder %s3348_s17, %s3348_s17 }
  0x8b   : > { %2989 = dma.hbm_to_vmem [thread:$0]  (!%p4460_p1), %s4461_s3, 256, %s408_s13, [#allocation7]  }
  0x8c   : > { %p3351_p5 = pnand %p3349_p4, %p4459_p9  ;;  %p3358_p11 = por %p3357_p10, %p3356_p8 }
  0x8e   : > { %p3352_p6 = pneg %p3351_p5 }
  0x90   : > { %p3359_p12 = pnand %p3358_p11, %p3352_p6 }
  0x92   : > { %3362 = shalt.err (!%p3359_p12)
}
  0x93   : > { %s4462_s13 = smov 8   ;;  %s4463_s20 = smov 128  }
  0x94   : > { %2995 = dma.hbm_to_vmem [thread:$0]  (!%p4460_p1), %s4398_s5, 2048, %s429_s30, [#allocation10], %s4463_s20, %s4463_s20, %s4462_s13  }
  0x95   : > { %s535_s21 = scalar_lea.vmem [#allocation17], %s3755_s1  ;;  %s3589_s24 = smov [#allocation8]  }
  0x96   : > { %s542_s27 = sshll.u32 %s535_s21, 4  ;;  %s3900_s18 = sshll.u32 %s3589_s24, 4  ;;  %s3898_s27 = int_to_ptr.vmem [resolvable:$true] %s542_s27  ;;  %s419_s18 = int_to_ptr.vmem [resolvable:$true] %s3900_s18 }
  0x97   : > { %s3363_s8 = scalar_lea.hbm %s3885_s25, 3072  ;;  %s3368_s28 = scalar_lea.hbm %s4404_s11, 36864 }
  0x98   : > { %p3364_p13 = scmp.ne.s32.totalorder %s3885_s25, %s3363_s8  ;;  %p3369_p4 = scmp.lt.s32.totalorder %s3885_s25, %s4404_s11 }
  0x99   : > { %p3370_p5 = scmp.lt.s32.totalorder %s3368_s28, %s3363_s8 }
  0x9a   : > { %p3366_p2 = pnand %p3364_p13, %p3779_p3 }
  0x9b   : > { %p3371_p6 = por %p3370_p5, %p3369_p4 }
  0x9c   : > { %p3367_p7 = pneg %p3366_p2 }
  0x9e   : > { %p3372_p8 = pnand %p3371_p6, %p3367_p7 }
  0xa0   : > { %3375 = shalt.err (!%p3372_p8)
}
  0xa1   : > { %s3376_s1 = scalar_lea.vmem %s3898_s27, 3072  ;;  %s3590_s30 = smov [#allocation17]  }
  0xa2   : > { %p3377_p10 = scmp.ne.s32.totalorder %s3898_s27, %s3376_s1  ;;  %s3381_s21 = sshll.u32 %s3590_s30, 4  ;;  %s3382_s21 = int_to_ptr.vmem [resolvable:$false] %s3381_s21 }
  0xa3   : > { %s3383_s24 = scalar_lea.vmem %s3382_s21, 6144  ;;  %p3384_p13 = scmp.lt.s32.totalorder %s3898_s27, %s3382_s21 }
  0xa4   : > { %p3379_p11 = pnand %p3377_p10, %p3779_p3  ;;  %p3385_p2 = scmp.lt.s32.totalorder %s3383_s24, %s3376_s1 }
  0xa6   : > { %p3380_p12 = pneg %p3379_p11  ;;  %p3386_p1 = por %p3385_p2, %p3384_p13 }
  0xa8   : > { %p3387_p9 = pnand %p3386_p1, %p3380_p12 }
  0xaa   : > { %3390 = shalt.err (!%p3387_p9)
}
  0xab   : > { %s4464_s3 = smov 4   ;;  %s4465_s2 = smov 64  }
  0xac   : > { %3014 = dma.hbm_to_vmem [thread:$0]  (!%p3757_p0), %s3885_s25, 3072, %s3898_s27, %s3773_s29, %s4465_s2, %s4465_s2, %s4464_s3  }
  0xad   : > { %s3402_s8 = scalar_lea.vmem %s419_s18, 256  ;;  %p4466_p4 = scmp.ne.s32.totalorder %s4451_s26, 0 }
  0xae   : > { %p3403_p7 = scmp.ne.s32.totalorder %s419_s18, %s3402_s8  ;;  %p3410_p8 = scmp.lt.s32.totalorder %s419_s18, %s419_s18 }
  0xaf   : > { %p3411_p1 = scmp.lt.s32.totalorder %s3402_s8, %s3402_s8 }
  0xb0   : > { %p3405_p5 = pnand %p3403_p7, %p4466_p4 }
  0xb1   : > { %p3412_p9 = por %p3411_p1, %p3410_p8 }
  0xb2   : > { %p3406_p6 = pneg %p3405_p5 }
  0xb4   : > { %p3413_p10 = pnand %p3412_p9, %p3406_p6 }
  0xb6   : > { %3416 = shalt.err (!%p3413_p10)
}
  0xb7   : > { %p4467_p11 = scmp.ne.s32.totalorder %s4449_s22, 0  ;;  %s3591_s28 = smov [#allocation11]  }
  0xb8   : > { %s441_s25 = sshll.u32 %s3591_s28, 4  ;;  %s3592_s27 = smov [#allocation12]   ;;  %s442_s25 = int_to_ptr.vmem [resolvable:$true] %s441_s25 }
  0xb9   : > { %2992 = dma.hbm_to_vmem [thread:$0]  (!%p4467_p11), %s4397_s4, 256, %s419_s18, [#allocation7]  }
  0xba   : > { %s454_s1 = sshll.u32 %s3592_s27, 4  ;;  %s3428_s30 = scalar_lea.vmem %s442_s25, 2048  ;;  %s455_s1 = int_to_ptr.vmem [resolvable:$true] %s454_s1 }
  0xbb   : > { %p3429_p12 = scmp.ne.s32.totalorder %s442_s25, %s3428_s30  ;;  %p3436_p7 = scmp.lt.s32.totalorder %s442_s25, %s442_s25 }
  0xbc   : > { %p3437_p5 = scmp.lt.s32.totalorder %s3428_s30, %s3428_s30 }
  0xbd   : > { %p3431_p13 = pnand %p3429_p12, %p4466_p4 }
  0xbe   : > { %p3438_p6 = por %p3437_p5, %p3436_p7 }
  0xbf   : > { %p3432_p2 = pneg %p3431_p13 }
  0xc1   : > { %p3439_p8 = pnand %p3438_p6, %p3432_p2 }
  0xc3   : > { %3442 = shalt.err (!%p3439_p8)
}
  0xc4   : > { %2998 = dma.hbm_to_vmem [thread:$0]  (!%p4467_p11), %s4399_s6, 2048, %s442_s25, [#allocation10], %s4463_s20, %s4463_s20, %s4462_s13  }
  0xc5   : > { %s2941_s24 = smul.u32 24, %s3752_s14  ;;  %s3454_s3 = scalar_lea.vmem %s455_s1, 4096 }
  0xc6   : > { %p3455_p1 = scmp.ne.s32.totalorder %s455_s1, %s3454_s3  ;;  %p3462_p12 = scmp.lt.s32.totalorder %s455_s1, %s455_s1 }
  0xc7   : > { %p3463_p13 = scmp.lt.s32.totalorder %s3454_s3, %s3454_s3 }
  0xc8   : > { %p3457_p9 = pnand %p3455_p1, %p4466_p4 }
  0xc9   : > { %p3464_p2 = por %p3463_p13, %p3462_p12 }
  0xca   : > { %p3458_p10 = pneg %p3457_p9 }
  0xcc   : > { %p3465_p7 = pnand %p3464_p2, %p3458_p10 }
  0xce   : > { %3468 = shalt.err (!%p3465_p7)
}
  0xcf   : > { %s3593_s2 = smov 256   ;;  %s3594_s8 = smov 16  }
  0xd0   : > { %3001 = dma.hbm_to_vmem [thread:$0]  (!%p4467_p11), %s4400_s7, 4096, %s455_s1, [#allocation13], %s3593_s2, %s3593_s2, %s3594_s8  }
  0xd1   : > { %s2942_s14 = smul.u32 384, %s3575_s16  ;;  %s556_s20 = scalar_lea.vmem [#allocation18], %s2941_s24 }
  0xd2   : > { %s564_s26 = sshll.u32 %s556_s20, 4  ;;  %s3474_s22 = scalar_lea.hbm %s4405_s12, 4608  ;;  %s565_s26 = int_to_ptr.vmem [resolvable:$true] %s564_s26 }
  0xd3   : > { %s562_s25 = scalar_lea.hbm %s4405_s12, %s2942_s14 }
  0xd4   : > { %s3469_s27 = scalar_lea.hbm %s562_s25, 384  ;;  %p3475_p11 = scmp.lt.s32.totalorder %s562_s25, %s4405_s12 }
  0xd5   : > { %p3470_p4 = scmp.ne.s32.totalorder %s562_s25, %s3469_s27  ;;  %p3476_p8 = scmp.lt.s32.totalorder %s3474_s22, %s3469_s27 }
  0xd7   : > { %p3472_p5 = pnand %p3470_p4, %p3779_p3  ;;  %p3477_p1 = por %p3476_p8, %p3475_p11 }
  0xd9   : > { %p3473_p6 = pneg %p3472_p5 }
  0xdb   : > { %p3478_p9 = pnand %p3477_p1, %p3473_p6 }
  0xdd   : > { %3481 = shalt.err (!%p3478_p9)
}
  0xde   : > { %s3482_s16 = scalar_lea.vmem %s565_s26, 384  ;;  %s3595_s1 = smov [#allocation18]  }
  0xdf   : > { %p3483_p10 = scmp.ne.s32.totalorder %s565_s26, %s3482_s16  ;;  %s3487_s24 = sshll.u32 %s3595_s1, 4  ;;  %s3488_s24 = int_to_ptr.vmem [resolvable:$false] %s3487_s24 }
  0xe0   : > { %s3489_s2 = scalar_lea.vmem %s3488_s24, 768  ;;  %p3490_p2 = scmp.lt.s32.totalorder %s565_s26, %s3488_s24 }
  0xe1   : > { %p3485_p12 = pnand %p3483_p10, %p3779_p3  ;;  %p3491_p7 = scmp.lt.s32.totalorder %s3489_s2, %s3482_s16 }
  0xe3   : > { %p3486_p13 = pneg %p3485_p12  ;;  %p3492_p4 = por %p3491_p7, %p3490_p2 }
  0xe5   : > { %p3493_p5 = pnand %p3492_p4, %p3486_p13 }
  0xe7   : > { %3496 = shalt.err (!%p3493_p5)
}
  0xe8   : > { %3017 = dma.hbm_to_vmem [thread:$0]  (!%p3757_p0), %s562_s25, 384, %s565_s26, %s3773_s29  }
  0xe9   : > { %p4468_p6 = scmp.ne.s32.totalorder %s4448_s19, 0 }
  0xea   : > { %s4469_s8 = sld [smem:[#allocation28_spill]] (!%p4468_p6) }
  0xeb   : > { %573 = sbr.rel (%p4468_p6) target bundleno = 3850 (0xf0a), region = 72 }
  0xf0   : > { %p4470_p11 = scmp.eq.s32.totalorder %s4469_s8, 0 }
  0xf2   : > { %3538 = dma.done.wait (%p4470_p11), [#allocation4], 4096   ;;  %p4471_p3 = pmov %p4470_p11 }
  0xf4   : > { %3540 = vsyncadd (%p4471_p3), [#allocation4], 4294963200  ;;  %p4472_p8 = pmov %p4471_p3 }
  0xf5   : > { %p4473_p1 = pmov %p4471_p3 }
  0xf6   : > { %3542 = dma.done.wait (%p4472_p8), [#allocation7], 512  }
  0xf7   : > { %3544 = vsyncadd (%p4473_p1), [#allocation7], 4294966784  ;;  %p4474_p9 = pmov %p4473_p1 }
  0xf8   : > { %p4475_p0 = pmov %p4473_p1 }
  0xf9   : > { %3546 = dma.done.wait (%p4474_p9), [#allocation10], 4096  }
  0xfa   : > { %3548 = vsyncadd (%p4475_p0), [#allocation10], 4294963200  ;;  %p4476_p10 = pmov %p4475_p0 }
  0xfb   : > { %p4477_p12 = pmov %p4475_p0 }
  0xfc   : > { %3550 = dma.done.wait (%p4476_p10), [#allocation13], 4096  }
  0xfd   : > { %3552 = vsyncadd (%p4477_p12), [#allocation13], 4294963200  ;;  %s4478_s0 = sld [smem:[#allocation26_spill]]  ;;  %s599_s23 = sand.u32 1, %s4469_s8  }
  0xfe   : > { %s4479_s19 = sld [smem:[#allocation29_spill]]  ;;  %s600_s13 = scalar_lea.sflag [#allocation4], %s599_s23 }
 0x103   : > { %s3989_s29 = sand.u32 1, %s4478_s0  }
 0x104   : > { %s2943_s17 = smul.u32 192, %s3989_s29  ;;  %p4480_p13 = scmp.ne.s32.totalorder %s4479_s19, 0 }
 0x106   : > { %s3992_s14 = scalar_lea.vmem [#allocation14], %s2943_s17 }
 0x107   : > { %3554 = dma.done.wait (%p4480_p13), %s600_s13, 10624  }
 0x108   : > { %3556 = vsyncadd (%p4480_p13), %s600_s13, 4294956672  ;;  %s2512_s20 = sshll.u32 %s3989_s29, 6  ;;  %s2944_s26 = smul.u32 24, %s3989_s29  ;;  %v4000_v0 = vld [vmem:[#allocation8] sm:$0xff]  ;;  %v4002_v1 = vld [vmem:[#allocation8 + $0x8] sm:$0xff] }
 0x109   : > { %v4004_v2 = vld [vmem:[#allocation6] sm:$0xff]  ;;  %v4006_v3 = vld [vmem:[#allocation6 + $0x8] sm:$0xff]  ;;  %v4012_v6 = vld [vmem:[#allocation9 + $0x10] sm:$0xff]  ;;  %s4040_s15 = scalar_lea.vmem [#allocation15], %s2512_s20  ;;  %s4042_s28 = scalar_lea.vmem [#allocation16], %s2943_s17 }
 0x10a   : > { %v4008_v4 = vld [vmem:[#allocation9] sm:$0xff]  ;;  %v4010_v5 = vld [vmem:[#allocation9 + $0x8] sm:$0xff]  ;;  %v4014_v7 = vld [vmem:[#allocation9 + $0x18] sm:$0xff]  ;;  %s4044_s25 = scalar_lea.vmem [#allocation17], %s2943_s17  ;;  %s4046_s27 = scalar_lea.vmem [#allocation18], %s2944_s26 }
 0x10b   : > { %v4016_v8 = vld [vmem:[#allocation9 + $0x20] sm:$0xff]  ;;  %v4018_v9 = vld [vmem:[#allocation9 + $0x28] sm:$0xff]  ;;  %v4020_v10 = vld [vmem:[#allocation9 + $0x30] sm:$0xff]  ;;  %p4481_p2 = scmp.ne.s32.totalorder %s4469_s8, 0 }
 0x10c   : > { %v4022_v11 = vld [vmem:[#allocation9 + $0x38] sm:$0xff]  ;;  %v4024_v12 = vld [vmem:[#allocation9 + $0x40] sm:$0xff]  ;;  %v4026_v13 = vld [vmem:[#allocation9 + $0x48] sm:$0xff]  ;;  %s4482_s22 = sld [smem:[#allocation32_spill]] (!%p4481_p2) }
 0x10d   : > { %v4028_v14 = vld [vmem:[#allocation9 + $0x50] sm:$0xff]  ;;  %v4030_v15 = vld [vmem:[#allocation9 + $0x58] sm:$0xff]  ;;  %v4032_v16 = vld [vmem:[#allocation9 + $0x60] sm:$0xff]  ;;  %723 = sbr.rel (%p4481_p2) target bundleno = 510 (0x1fe), region = 120  ;;  %s4483_s24 = sld [smem:[#allocation33_spill]] (!%p4481_p2) }
 0x10e   : > { %v4034_v17 = vld [vmem:[#allocation9 + $0x68] sm:$0xff]  ;;  %v4036_v18 = vld [vmem:[#allocation9 + $0x70] sm:$0xff]  ;;  %v4038_v19 = vld [vmem:[#allocation9 + $0x78] sm:$0xff] }
 0x112   : > { %v757_v20 = vld [vmem:[#allocation3 + $0xf8] sm:$0xff]  ;;  %v756_v22 = vld [vmem:[#allocation3 + $0xf0] sm:$0xff]  ;;  %v755_v24 = vld [vmem:[#allocation3 + $0xe8] sm:$0xff]  ;;  %v758_v54 = vlaneseq }
 0x113   : > { %v741_v21 = vld [vmem:[#allocation3 + $0x78] sm:$0xff]  ;;  %2600 = vmatprep.subr.mxu0 %v757_v20  ;;  %v740_v23 = vld [vmem:[#allocation3 + $0x70] sm:$0xff]  ;;  %v739_v25 = vld [vmem:[#allocation3 + $0x68] sm:$0xff] }
 0x114   : > { %2601 = vmatpush3.msra.mxu0 %v741_v21  ;;  %v754_v26 = vld [vmem:[#allocation3 + $0xe0] sm:$0xff]  ;;  %v753_v28 = vld [vmem:[#allocation3 + $0xd8] sm:$0xff]  ;;  %v752_v30 = vld [vmem:[#allocation3 + $0xd0] sm:$0xff]  ;;  %v759_v55 = vshrl.u32 %v758_v54, 7 }
 0x115   : > { %2602 = vmatprep.subr.mxu0 %v756_v22  ;;  %v738_v27 = vld [vmem:[#allocation3 + $0x60] sm:$0xff]  ;;  %v737_v29 = vld [vmem:[#allocation3 + $0x58] sm:$0xff]  ;;  %v736_v31 = vld [vmem:[#allocation3 + $0x50] sm:$0xff] }
 0x116   : > { %2603 = vmatpush3.msra.mxu0 %v740_v23  ;;  %v751_v32 = vld [vmem:[#allocation3 + $0xc8] sm:$0xff]  ;;  %v725_v33 = vld [vmem:[%s4482_s22 + $0x8] sm:$0xff]  ;;  %v749_v37 = vld [vmem:[#allocation3 + $0xb8] sm:$0xff]  ;;  %v760_v56 = vsub.s32 0, %v759_v55  ;;  %v838_v59 = vsub.s32 2, %v759_v55 }
 0x117   : > { %2604 = vmatprep.subr.mxu0 %v755_v24  ;;  %v735_v34 = vld [vmem:[#allocation3 + $0x48] sm:$0xff]  ;;  %826 = vmatprep.mubr.f32.mxu0 %v725_v33  ;;  %v750_v35 = vld [vmem:[#allocation3 + $0xc0] sm:$0xff]  ;;  %v733_v38 = vld [vmem:[#allocation3 + $0x38] sm:$0xff] }
 0x118   : > { %2605 = vmatpush3.msra.mxu0 %v739_v25  ;;  %v734_v36 = vld [vmem:[#allocation3 + $0x40] sm:$0xff]  ;;  %v748_v39 = vld [vmem:[#allocation3 + $0xb0] sm:$0xff]  ;;  %v747_v41 = vld [vmem:[#allocation3 + $0xa8] sm:$0xff]  ;;  %v761_v58 = vrot.slane %v4000_v0, %v760_v56  ;;  %v839_v20 = vrot.slane %v4000_v0, %v838_v59 }
 0x119   : > { %2606 = vmatprep.subr.mxu0 %v754_v26  ;;  %v732_v40 = vld [vmem:[#allocation3 + $0x30] sm:$0xff]  ;;  %v731_v42 = vld [vmem:[#allocation3 + $0x28] sm:$0xff]  ;;  %v746_v43 = vld [vmem:[#allocation3 + $0xa0] sm:$0xff] }
 0x11a   : > { %2607 = vmatpush3.msra.mxu0 %v738_v27  ;;  %v730_v44 = vld [vmem:[#allocation3 + $0x20] sm:$0xff]  ;;  %v745_v45 = vld [vmem:[#allocation3 + $0x98] sm:$0xff]  ;;  %v744_v47 = vld [vmem:[#allocation3 + $0x90] sm:$0xff] }
 0x11b   : > { %2608 = vmatprep.subr.mxu0 %v753_v28  ;;  %v729_v46 = vld [vmem:[#allocation3 + $0x18] sm:$0xff]  ;;  %v728_v48 = vld [vmem:[#allocation3 + $0x10] sm:$0xff]  ;;  %v743_v49 = vld [vmem:[#allocation3 + $0x88] sm:$0xff] }
 0x11c   : > { %2609 = vmatpush3.msra.mxu0 %v737_v29  ;;  %v727_v50 = vld [vmem:[#allocation3 + $0x8] sm:$0xff]  ;;  %v742_v51 = vld [vmem:[#allocation3 + $0x80] sm:$0xff]  ;;  %v724_v53 = vld [vmem:[%s4482_s22] sm:$0xff] }
 0x11d   : > { %2610 = vmatprep.subr.mxu0 %v752_v30  ;;  %v726_v52 = vld [vmem:[#allocation3] sm:$0xff]  ;;  %v834_v62 = vld [vmem:[%s4483_s24] sm:$0xff] }
 0x11e   : > { %2611 = vmatpush3.msra.mxu0 %v736_v31  ;;  %vm835_vm0 = vcmp.gt.f32.partialorder %v834_v62, 0.5 }
 0x11f   : > { %2612 = vmatprep.subr.mxu0 %v751_v32 }
 0x120   : > { %2613 = vmatpush3.msra.mxu0 %v735_v34 }
 0x121   : > { %2614 = vmatprep.subr.mxu0 %v750_v35 }
 0x122   : > { %2615 = vmatpush3.msra.mxu0 %v734_v36 }
 0x123   : > { %2616 = vmatprep.subr.mxu0 %v749_v37 }
 0x124   : > { %2617 = vmatpush3.msra.mxu0 %v733_v38 }
 0x125   : > { %2618 = vmatprep.subr.mxu0 %v748_v39 }
 0x126   : > { %2619 = vmatpush3.msra.mxu0 %v732_v40 }
 0x127   : > { %2620 = vmatprep.subr.mxu0 %v747_v41 }
 0x128   : > { %2621 = vmatpush3.msra.mxu0 %v731_v42 }
 0x129   : > { %2622 = vmatprep.subr.mxu0 %v746_v43 }
 0x12a   : > { %2623 = vmatpush3.msra.mxu0 %v730_v44 }
 0x12b   : > { %2624 = vmatprep.subr.mxu0 %v745_v45 }
 0x12c   : > { %2625 = vmatpush3.msra.mxu0 %v729_v46 }
 0x12d   : > { %2626 = vmatprep.subr.mxu0 %v744_v47 }
 0x12e   : > { %2627 = vmatpush3.msra.mxu0 %v728_v48 }
 0x12f   : > { %2628 = vmatprep.subr.mxu0 %v743_v49 }
 0x130   : > { %2629 = vmatpush3.msra.mxu0 %v727_v50 }
 0x131   : > { %2630 = vmatprep.subr.mxu0 %v742_v51 }
 0x132   : > { %2631 = vmatpush3.msra.mxu0 %v726_v52 }
 0x133   : > { %827 = vmatmul.mubr.f32.vlgmr.msra.gmra.mxu0 %v724_v53 }
 0x1f3   : > { %v2632_v57 = vpop.f32.mrf.mxu0 }
 0x1f5   : > { %v2633_v60 = vpop.f32.mrf.mxu0 }
 0x1f6   : > { %v2634_v61 = vadd.f32 %v2633_v60, %v2632_v57 }
 0x1f8   : > { %v829_v63 = vadd.f32 %v2634_v61, %v761_v58 }
 0x1fa   : > { %832 = vst [vmem:[#allocation19] sm:$0xff] %v829_v63  ;;  %v833_v21 = vadd.f32 %v829_v63, %v4004_v2 }
 0x1fc   : > { %v840_v22 = vsel %vm835_vm0, %v833_v21, %v839_v20 }
 0x1fd   : > { %841 = vst [vmem:[#allocation2] sm:$0xff] %v840_v22 }
 0x1fe PF: > { %v3085_v24 = vld [vmem:[%s3992_s14 + $0xac] ss:$12 sps:$4 sm:$0xff]   ;;  %v3087_v25 = vld [vmem:[%s3992_s14 + $0xa8] ss:$12 sps:$4 sm:$0xff]   ;;  %v3596_v26 = vmov 0.0   ;;  %v850_v31 = vlaneseq  ;;  %v3597_v50 = vmov 0  }
 0x1ff   : > { %2745 = vmatprep.subr.bf16.mxu1 %v3596_v26  ;;  %v3088_v27 = vld [vmem:[%s3992_s14 + $0xb0] ss:$12 sps:$4 sm:$0xff]   ;;  %v3089_v28 = vld [vmem:[%s3992_s14 + $0x94] ss:$12 sps:$4 sm:$0xff]   ;;  %1045 = vmatprep.subr.bf16.mxu0 %v3085_v24  ;;  %v3092_v30 = vld [vmem:[%s3992_s14 + $0x98] ss:$12 sps:$4 sm:$0xff]  }
 0x200   : > { %v3091_v29 = vld [vmem:[%s3992_s14 + $0x90] ss:$12 sps:$4 sm:$0xff]   ;;  %1046 = vmatpush1.bf16.msra.mxu0 %v3087_v25  ;;  %2746 = vmatpush3.bf16.msra.mxu1 %v3088_v27  ;;  %v4074_v32 = vshrl.u32 %v850_v31, 7  ;;  %v3095_v41 = vld [vmem:[%s3992_s14 + $0x78] ss:$12 sps:$4 sm:$0xff]   ;;  %vm3598_vm1 = vmmov 0  }
 0x201   : > { %1047 = vmatprep.subr.bf16.mxu0 %v3089_v28  ;;  %2747 = vmatprep.subr.bf16.mxu1 %v3596_v26  ;;  %v3093_v40 = vld [vmem:[%s3992_s14 + $0x7c] ss:$12 sps:$4 sm:$0xff]   ;;  %v3096_v42 = vld [vmem:[%s3992_s14 + $0x80] ss:$12 sps:$4 sm:$0xff]   ;;  %v3097_v43 = vld [vmem:[%s3992_s14 + $0x64] ss:$12 sps:$4 sm:$0xff]  }
 0x202   : > { %v4077_v33 = vsub.s32 1, %v4074_v32  ;;  %v3099_v44 = vld [vmem:[%s3992_s14 + $0x60] ss:$12 sps:$4 sm:$0xff]   ;;  %v3100_v45 = vld [vmem:[%s3992_s14 + $0x68] ss:$12 sps:$4 sm:$0xff]   ;;  %1077 = vmatprep.mubr.bf16.mxu0 %v3597_v50  ;;  %2761 = vmatprep.mubr.msk.bf16.mxu1 %vm3598_vm1, %v3596_v26  ;;  %v4114_v62 = vsub.s32 2, %v4074_v32 }
 0x203   : > { %v3101_v46 = vld [vmem:[%s3992_s14 + $0x4c] ss:$12 sps:$4 sm:$0xff]   ;;  %v3103_v47 = vld [vmem:[%s3992_s14 + $0x48] ss:$12 sps:$4 sm:$0xff]   ;;  %v3104_v48 = vld [vmem:[%s3992_s14 + $0x50] ss:$12 sps:$4 sm:$0xff]  }
 0x204   : > { %v4062_v23 = vld [vmem:[#allocation2] sm:$0xff]  ;;  %1048 = vmatpush1.bf16.msra.mxu0 %v3091_v29  ;;  %2748 = vmatpush3.bf16.msra.mxu1 %v3092_v30  ;;  %v4081_v36 = vrot.slane %v4002_v1, %v4077_v33  ;;  %v3105_v49 = vld [vmem:[%s3992_s14 + $0x34] ss:$12 sps:$4 sm:$0xff]   ;;  %v3113_v56 = vld [vmem:[%s3992_s14 + $0x4] ss:$12 sps:$4 sm:$0xff]   ;;  %v4163_v30 = vsub.s32 0, %v4074_v32 }
 0x205   : > { %846 = vadd.xlane.f32.xlu0 %v4062_v23  ;;  %2749 = vmatprep.subr.bf16.mxu1 %v3596_v26  ;;  %v3107_v51 = vld [vmem:[%s3992_s14 + $0x30] ss:$12 sps:$4 sm:$0xff]   ;;  %v3108_v52 = vld [vmem:[%s3992_s14 + $0x38] ss:$12 sps:$4 sm:$0xff]   ;;  %v3112_v55 = vld [vmem:[%s3992_s14 + $0x20] ss:$12 sps:$4 sm:$0xff]  }
 0x206   : > { %1049 = vmatprep.subr.bf16.mxu0 %v3093_v40  ;;  %v3109_v53 = vld [vmem:[%s3992_s14 + $0x1c] ss:$12 sps:$4 sm:$0xff]   ;;  %v3111_v54 = vld [vmem:[%s3992_s14 + $0x18] ss:$12 sps:$4 sm:$0xff]   ;;  %v3115_v57 = vld [vmem:[%s3992_s14] ss:$12 sps:$4 sm:$0xff]  }
 0x207   : > { %v3116_v58 = vld [vmem:[%s3992_s14 + $0x8] ss:$12 sps:$4 sm:$0xff]   ;;  %v4117_v63 = vld [vmem:[%s4046_s27] sm:$0xff]  ;;  %s4484_s2 = sld [smem:[#allocation28_spill]] }
 0x208   : > { %1050 = vmatpush1.bf16.msra.mxu0 %v3095_v41  ;;  %2750 = vmatpush3.bf16.msra.mxu1 %v3096_v42  ;;  %v4120_v20 = vld [vmem:[%s4046_s27 + $0x8] sm:$0xff]  ;;  %v865_v21 = vrot.slane %v4117_v63, %v4114_v62 }
 0x209   : > { %2751 = vmatprep.subr.bf16.mxu1 %v3596_v26  ;;  %1051 = vmatprep.subr.bf16.mxu0 %v3097_v43  ;;  %v870_v25 = vrot.slane %v4120_v20, %v4114_v62  ;;  %v912_v31 = vrot.slane %v4120_v20, %v4163_v30 }
 0x20c   : > { %1052 = vmatpush1.bf16.msra.mxu0 %v3099_v44  ;;  %2752 = vmatpush3.bf16.msra.mxu1 %v3100_v45 }
 0x20d   : > { %1053 = vmatprep.subr.bf16.mxu0 %v3101_v46  ;;  %2753 = vmatprep.subr.bf16.mxu1 %v3596_v26  ;;  %p2594_p7 = scmp.ne.s32.totalorder %s4484_s2, 11 }
 0x20e   : > { %s4485_s19 = sld [smem:[#allocation38_spill]] (!%p2594_p7) }
 0x210   : > { %1054 = vmatpush1.bf16.msra.mxu0 %v3103_v47  ;;  %2754 = vmatpush3.bf16.msra.mxu1 %v3104_v48 }
 0x211   : > { %1055 = vmatprep.subr.bf16.mxu0 %v3105_v49  ;;  %2755 = vmatprep.subr.bf16.mxu1 %v3596_v26 }
 0x214   : > { %1056 = vmatpush1.bf16.msra.mxu0 %v3107_v51  ;;  %2756 = vmatpush3.bf16.msra.mxu1 %v3108_v52 }
 0x215   : > { %1057 = vmatprep.subr.bf16.mxu0 %v3109_v53  ;;  %2757 = vmatprep.subr.bf16.mxu1 %v3596_v26 }
 0x218   : > { %1058 = vmatpush1.bf16.msra.mxu0 %v3111_v54  ;;  %2758 = vmatpush3.bf16.msra.mxu1 %v3112_v55 }
 0x219   : > { %1059 = vmatprep.subr.bf16.mxu0 %v3113_v56  ;;  %2759 = vmatprep.subr.bf16.mxu1 %v3596_v26 }
 0x21c   : > { %1060 = vmatpush1.bf16.msra.mxu0 %v3115_v57  ;;  %2760 = vmatpush3.bf16.msra.mxu1 %v3116_v58 }
 0x21d   : > { %2765 = vmatprep.subr.bf16.mxu0 %v3596_v26  ;;  %2785 = vmatprep.subr.mxu1 %v3596_v26 }
 0x28e   : > { %v847_v34 = vpop.xlane.xlu0 %846 }
 0x28f   : > { %v848_v35 = vmul.f32 0.010416667, %v847_v34 }
 0x291   : > { %v849_v37 = vsub.f32 %v4062_v23, %v848_v35 }
 0x293   : > { %v854_v38 = vmul.f32 %v4081_v36, %v849_v37 }
 0x295   : > { %v855_v39 = vmul.f32 %v854_v38, %v854_v38 }
 0x297   : > { %856 = vadd.xlane.f32.xlu0 %v855_v39 }
 0x320   : > { %v857_v59 = vpop.xlane.xlu0 %856 }
 0x321   : > { %v858_v60 = vmul.f32 0.010416667, %v857_v59 }
 0x323   : > { %v859_v61 = vadd.f32 1e-05, %v858_v60 }
 0x325   : > { %3181 = vrsqrt.f32 %v859_v61 }
 0x332   : > { %v3182_v22 = vpop.eup %3181 }
 0x333   : > { %v861_v24 = vmul.f32 %v3182_v22, %v849_v37 }
 0x335   : > { %v866_v27 = vmul.f32 %v865_v21, %v861_v24 }
 0x337   : > { %v871_v28 = vadd.f32 %v870_v25, %v866_v27 }
 0x339   : > { %v904_v29 = vpack.c.bf16 %v871_v28, %v871_v28 }
 0x33b   : > { %1078 = vmatmul.mubr.bf16.vlgmr.msra.gmra.mxu0 %v904_v29  ;;  %2762 = vmatmul.mubr.bf16.vlgmr.msra.gmra.mxu1 %v904_v29  ;;  %v908_v29 = vrot.slane %v4117_v63, %v4163_v30 }
 0x33c   : > { %2781 = vmatprep.mubr.msk.bf16.mxu0 %vm3598_vm1, %v3596_v26  ;;  %2786 = vmatpush3.msra.mxu1 %v4038_v19 }
 0x33d   : > { %2787 = vmatprep.subr.mxu1 %v3596_v26  ;;  %2817 = vmatprep.mubr.msk.f32.mxu1 %vm3598_vm1, %v3596_v26 }
 0x33e   : > { %2788 = vmatpush3.msra.mxu1 %v4036_v18 }
 0x33f   : > { %2789 = vmatprep.subr.mxu1 %v3596_v26 }
 0x340   : > { %2790 = vmatpush3.msra.mxu1 %v4034_v17 }
 0x341   : > { %2791 = vmatprep.subr.mxu1 %v3596_v26 }
 0x342   : > { %2792 = vmatpush3.msra.mxu1 %v4032_v16 }
 0x343   : > { %2793 = vmatprep.subr.mxu1 %v3596_v26 }
 0x344   : > { %2794 = vmatpush3.msra.mxu1 %v4030_v15 }
 0x345   : > { %2795 = vmatprep.subr.mxu1 %v3596_v26 }
 0x346   : > { %2796 = vmatpush3.msra.mxu1 %v4028_v14 }
 0x347   : > { %2797 = vmatprep.subr.mxu1 %v3596_v26 }
 0x348   : > { %2798 = vmatpush3.msra.mxu1 %v4026_v13 }
 0x349   : > { %2799 = vmatprep.subr.mxu1 %v3596_v26 }
 0x34a   : > { %2800 = vmatpush3.msra.mxu1 %v4024_v12 }
 0x34b   : > { %2801 = vmatprep.subr.mxu1 %v3596_v26 }
 0x34c   : > { %2802 = vmatpush3.msra.mxu1 %v4022_v11 }
 0x34d   : > { %2803 = vmatprep.subr.mxu1 %v3596_v26 }
 0x34e   : > { %2804 = vmatpush3.msra.mxu1 %v4020_v10 }
 0x34f   : > { %2805 = vmatprep.subr.mxu1 %v3596_v26 }
 0x350   : > { %2806 = vmatpush3.msra.mxu1 %v4018_v9 }
 0x351   : > { %2807 = vmatprep.subr.mxu1 %v3596_v26 }
 0x352   : > { %2808 = vmatpush3.msra.mxu1 %v4016_v8 }
 0x353   : > { %2809 = vmatprep.subr.mxu1 %v3596_v26 }
 0x354   : > { %2810 = vmatpush3.msra.mxu1 %v4014_v7 }
 0x355   : > { %2811 = vmatprep.subr.mxu1 %v3596_v26 }
 0x356   : > { %2812 = vmatpush3.msra.mxu1 %v4012_v6 }
 0x357   : > { %2813 = vmatprep.subr.mxu1 %v3596_v26 }
 0x358   : > { %2814 = vmatpush3.msra.mxu1 %v4010_v5 }
 0x359   : > { %2815 = vmatprep.subr.mxu1 %v3596_v26 }
 0x35a   : > { %2816 = vmatpush3.msra.mxu1 %v4008_v4 }
 0x35b   : > { %2820 = vmatprep.subr.bf16.mxu1 %v3596_v26 }
 0x3fb   : > { %v1079_v34 = vpop.f32.mrf.mxu0  ;;  %v4167_v35 = vpop.f32.mrf.mxu1 }
 0x3fd   : > { %v1081_v37 = vpop.f32.mrf.mxu0  ;;  %v2763_v38 = vpop.f32.mrf.mxu1 }
 0x3fe   : > { %v1082_v39 = vadd.f32 %v1081_v37, %v912_v31  ;;  %v1080_v37 = vadd.f32 %v1079_v34, %v908_v29 }
 0x3ff   : > { %v1083_v40 = vpop.f32.mrf.mxu0  ;;  %v1123_v41 = vpop.f32.mrf.mxu1 }
 0x400   : > { %v1140_v42 = vmul.f32 %v1082_v39, %v4036_v18  ;;  %v1141_v43 = vmul.f32 %v1082_v39, %v4038_v19  ;;  %v1138_v47 = vmul.f32 %v1082_v39, %v4032_v16  ;;  %v1139_v48 = vmul.f32 %v1082_v39, %v4034_v17 }
 0x401   : > { %v1084_v44 = vpop.f32.mrf.mxu0  ;;  %v2764_v45 = vpop.f32.mrf.mxu1  ;;  %v1136_v51 = vmul.f32 %v1082_v39, %v4028_v14  ;;  %v1137_v52 = vmul.f32 %v1082_v39, %v4030_v15  ;;  %v1134_v54 = vmul.f32 %v1082_v39, %v4024_v12  ;;  %v1135_v55 = vmul.f32 %v1082_v39, %v4026_v13 }
 0x402   : > { %v1150_v46 = vpack.c.bf16 %v1141_v43, %v1140_v42  ;;  %v1149_v49 = vpack.c.bf16 %v1139_v48, %v1138_v47  ;;  %v1132_v57 = vmul.f32 %v1082_v39, %v4020_v10  ;;  %v1133_v58 = vmul.f32 %v1082_v39, %v4022_v11 }
 0x403   : > { %v1148_v53 = vpack.c.bf16 %v1137_v52, %v1136_v51  ;;  %v1147_v56 = vpack.c.bf16 %v1135_v55, %v1134_v54  ;;  %v1130_v60 = vmul.f32 %v1082_v39, %v4016_v8  ;;  %v1131_v61 = vmul.f32 %v1082_v39, %v4018_v9 }
 0x404   : > { %2766 = vmatpush3.bf16.xpose.msra.mxu0 %v1150_v46  ;;  %v1146_v59 = vpack.c.bf16 %v1133_v58, %v1132_v57  ;;  %v1128_v22 = vmul.f32 %v1082_v39, %v4012_v6  ;;  %v1129_v24 = vmul.f32 %v1082_v39, %v4014_v7  ;;  %v1126_v27 = vmul.f32 %v1082_v39, %v4008_v4  ;;  %v4199_v46 = vld [vmem:[%s4046_s27 + $0x10] sm:$0xff] }
 0x405   : > { %2767 = vmatprep.subr.bf16.mxu0 %v3596_v26  ;;  %v1145_v21 = vpack.c.bf16 %v1131_v61, %v1130_v60  ;;  %v1127_v28 = vmul.f32 %v1082_v39, %v4010_v5  ;;  %v1142_v38 = vpack.c.bf16 %v1080_v37, %v1080_v37  ;;  %v916_v34 = vrot.slane %v4199_v46, %v4163_v30  ;;  %v3119_v61 = vld [vmem:[%s4040_s15 + $0x28] sm:$0xff]  }
 0x406   : > { %v1144_v25 = vpack.c.bf16 %v1129_v24, %v1128_v22  ;;  %v3123_v22 = vld [vmem:[%s4040_s15 + $0x8] sm:$0xff]  }
 0x407   : > { %v1143_v31 = vpack.c.bf16 %v1127_v28, %v1126_v27  ;;  %v1121_v48 = vadd.f32 %v4167_v35, %v916_v34 }
 0x409   : > { %v1283_v51 = vmul.f32 %v1121_v48, %v4038_v19  ;;  %v1281_v54 = vmul.f32 %v1121_v48, %v4034_v17  ;;  %v1279_v19 = vmul.f32 %v1121_v48, %v4030_v15  ;;  %v1277_v17 = vmul.f32 %v1121_v48, %v4026_v13 }
 0x40a   : > { %v1274_v57 = vmul.f32 %v1121_v48, %v4020_v10  ;;  %v1275_v58 = vmul.f32 %v1121_v48, %v4022_v11  ;;  %v1272_v15 = vmul.f32 %v1121_v48, %v4016_v8  ;;  %v1270_v13 = vmul.f32 %v1121_v48, %v4012_v6  ;;  %v3117_v6 = vld [vmem:[%s4040_s15 + $0x38] sm:$0xff]  }
 0x40b   : > { %v1271_v10 = vmul.f32 %v1121_v48, %v4014_v7  ;;  %v1268_v8 = vmul.f32 %v1121_v48, %v4008_v4  ;;  %v1269_v60 = vmul.f32 %v1121_v48, %v4010_v5  ;;  %v3118_v7 = vld [vmem:[%s4040_s15 + $0x30] sm:$0xff]   ;;  %v3120_v4 = vld [vmem:[%s4040_s15 + $0x20] sm:$0xff]   ;;  %v3121_v5 = vld [vmem:[%s4040_s15 + $0x18] sm:$0xff]  }
 0x40c   : > { %2768 = vmatpush3.bf16.xpose.msra.mxu0 %v1149_v49  ;;  %v1282_v49 = vmul.f32 %v1121_v48, %v4036_v18  ;;  %v1278_v18 = vmul.f32 %v1121_v48, %v4028_v14  ;;  %v1288_v14 = vpack.c.bf16 %v1275_v58, %v1274_v57  ;;  %v3139_v57 = vld [vmem:[%s4042_s28 + $0x64] ss:$12 sps:$4 sm:$0xff]   ;;  %v3140_v58 = vld [vmem:[%s4042_s28 + $0x68] ss:$12 sps:$4 sm:$0xff]  }
 0x40d   : > { %2769 = vmatprep.subr.bf16.mxu0 %v3596_v26  ;;  %v1286_v11 = vpack.c.bf16 %v1271_v10, %v1270_v13  ;;  %v3147_v13 = vld [vmem:[%s4042_s28 + $0x34] ss:$12 sps:$4 sm:$0xff]   ;;  %v3148_v10 = vld [vmem:[%s4042_s28 + $0x38] ss:$12 sps:$4 sm:$0xff]  }
 0x40e   : > { %v1292_v52 = vpack.c.bf16 %v1283_v51, %v1282_v49  ;;  %v1290_v55 = vpack.c.bf16 %v1279_v19, %v1278_v18  ;;  %v3125_v49 = vld [vmem:[%s4042_s28 + $0xa8] ss:$12 sps:$4 sm:$0xff]   ;;  %v3127_v51 = vld [vmem:[%s4042_s28 + $0xac] ss:$12 sps:$4 sm:$0xff]  }
 0x414   : > { %2770 = vmatpush3.bf16.xpose.msra.mxu0 %v1148_v53  ;;  %v1280_v53 = vmul.f32 %v1121_v48, %v4032_v16  ;;  %v1276_v16 = vmul.f32 %v1121_v48, %v4024_v12 }
 0x415   : > { %2771 = vmatprep.subr.bf16.mxu0 %v3596_v26 }
 0x416   : > { %v1291_v35 = vpack.c.bf16 %v1281_v54, %v1280_v53  ;;  %v3132_v53 = vld [vmem:[%s4042_s28 + $0x98] ss:$12 sps:$4 sm:$0xff]  }
 0x41c   : > { %2772 = vmatpush3.bf16.xpose.msra.mxu0 %v1147_v56  ;;  %v1289_v56 = vpack.c.bf16 %v1277_v17, %v1276_v16  ;;  %v3133_v16 = vld [vmem:[%s4042_s28 + $0x78] ss:$12 sps:$4 sm:$0xff]   ;;  %v3135_v17 = vld [vmem:[%s4042_s28 + $0x7c] ss:$12 sps:$4 sm:$0xff]  }
 0x41d   : > { %2773 = vmatprep.subr.bf16.mxu0 %v3596_v26 }
 0x424   : > { %2774 = vmatpush3.bf16.xpose.msra.mxu0 %v1146_v59  ;;  %v1273_v59 = vmul.f32 %v1121_v48, %v4018_v9  ;;  %v1285_v9 = vpack.c.bf16 %v1269_v60, %v1268_v8  ;;  %v3151_v8 = vld [vmem:[%s4042_s28 + $0x1c] ss:$12 sps:$4 sm:$0xff]   ;;  %v3152_v60 = vld [vmem:[%s4042_s28 + $0x20] ss:$12 sps:$4 sm:$0xff]  }
 0x425   : > { %2775 = vmatprep.subr.bf16.mxu0 %v3596_v26 }
 0x426   : > { %v1287_v12 = vpack.c.bf16 %v1273_v59, %v1272_v15  ;;  %v3143_v15 = vld [vmem:[%s4042_s28 + $0x4c] ss:$12 sps:$4 sm:$0xff]   ;;  %v3144_v59 = vld [vmem:[%s4042_s28 + $0x50] ss:$12 sps:$4 sm:$0xff]  }
 0x42c   : > { %2776 = vmatpush3.bf16.xpose.msra.mxu0 %v1145_v21  ;;  %v3122_v21 = vld [vmem:[%s4040_s15 + $0x10] sm:$0xff]  }
 0x42d   : > { %2777 = vmatprep.subr.bf16.mxu0 %v3596_v26 }
 0x434   : > { %2778 = vmatpush3.bf16.xpose.msra.mxu0 %v1144_v25 }
 0x435   : > { %2779 = vmatprep.subr.bf16.mxu0 %v3596_v26 }
 0x43c   : > { %2780 = vmatpush3.bf16.xpose.msra.mxu0 %v1143_v31  ;;  %v3124_v31 = vld [vmem:[%s4040_s15] sm:$0xff]  }
 0x43d   : > { %2840 = vmatprep.subr.bf16.mxu0 %v3596_v26 }
 0x443   : > { %2782 = vmatmul.mubr.bf16.vlgmr.msra.gmra.mxu0 %v1142_v38 }
 0x444   : > { %2856 = vmatprep.mubr.msk.bf16.mxu0 %vm3598_vm1, %v3596_v26  ;;  %2841 = vmatpush3.bf16.msra.mxu0 %v3117_v6  ;;  %v3155_v6 = vld [vmem:[%s4042_s28 + $0x4] ss:$12 sps:$4 sm:$0xff]  }
 0x445   : > { %2842 = vmatprep.subr.bf16.mxu0 %v3596_v26 }
 0x448   : > { %2843 = vmatpush3.bf16.msra.mxu0 %v3118_v7  ;;  %v3156_v7 = vld [vmem:[%s4042_s28 + $0x8] ss:$12 sps:$4 sm:$0xff]  }
 0x449   : > { %2844 = vmatprep.subr.bf16.mxu0 %v3596_v26 }
 0x44c   : > { %2845 = vmatpush3.bf16.msra.mxu0 %v3119_v61  ;;  %v3153_v61 = vld [vmem:[%s4042_s28] ss:$12 sps:$4 sm:$0xff]  }
 0x44d   : > { %2846 = vmatprep.subr.bf16.mxu0 %v3596_v26 }
 0x450   : > { %2847 = vmatpush3.bf16.msra.mxu0 %v3120_v4 }
 0x451   : > { %2848 = vmatprep.subr.bf16.mxu0 %v3596_v26 }
 0x454   : > { %2849 = vmatpush3.bf16.msra.mxu0 %v3121_v5 }
 0x455   : > { %2850 = vmatprep.subr.bf16.mxu0 %v3596_v26 }
 0x458   : > { %2851 = vmatpush3.bf16.msra.mxu0 %v3122_v21 }
 0x459   : > { %2852 = vmatprep.subr.bf16.mxu0 %v3596_v26 }
 0x45c   : > { %2853 = vmatpush3.bf16.msra.mxu0 %v3123_v22  ;;  %v1459_v22 = vrot.slane %v4199_v46, %v4114_v62 }
 0x45d   : > { %2854 = vmatprep.subr.bf16.mxu0 %v3596_v26 }
 0x460   : > { %2855 = vmatpush3.bf16.msra.mxu0 %v3124_v31 }
 0x461   : > { %2860 = vmatprep.subr.bf16.mxu0 %v3596_v26 }
 0x503   : > { %v1185_v40 = vpop.f32.mrf.mxu0 }
 0x504   : > { %v1186_v41 = vadd.f32 %v1185_v40, %v4006_v3 }
 0x505   : > { %v2783_v42 = vpop.f32.mrf.mxu0 }
 0x506   : > { %1191 = vmax.xlane.f32.xlu1 %v1186_v41 }
 0x507   : > { %v1188_v39 = vpop.f32.mrf.mxu0 }
 0x509   : > { %v2784_v43 = vpop.f32.mrf.mxu0 }
 0x58f   : > { %v1192_v44 = vpop.xlane.xlu1 %1191 }
 0x590   : > { %v1193_v45 = vsub.f32 %v1186_v41, %v1192_v44 }
 0x592   : > { %v1194_v47 = vmul.f32 1.442695, %v1193_v45 }
 0x594   : > { %3183 = vpow2.f32 %v1194_v47 }
 0x5a1   : > { %v4206_v3 = vpop.eup %3183 }
 0x5a2   : > { %2818 = vmatmul.mubr.f32.vlgmr.msra.gmra.mxu1 %v4206_v3 }
 0x5a3   : > { %2821 = vmatpush3.bf16.msra.mxu1 %v1292_v52  ;;  %2836 = vmatprep.mubr.msk.bf16.mxu1 %vm3598_vm1, %v3596_v26  ;;  %v3131_v52 = vld [vmem:[%s4042_s28 + $0x94] ss:$12 sps:$4 sm:$0xff]  }
 0x5a4   : > { %2822 = vmatprep.subr.bf16.mxu1 %v3596_v26 }
 0x5a7   : > { %2823 = vmatpush3.bf16.msra.mxu1 %v1291_v35 }
 0x5a8   : > { %2824 = vmatprep.subr.bf16.mxu1 %v3596_v26 }
 0x5ab   : > { %2825 = vmatpush3.bf16.msra.mxu1 %v1290_v55 }
 0x5ac   : > { %2826 = vmatprep.subr.bf16.mxu1 %v3596_v26 }
 0x5af   : > { %2827 = vmatpush3.bf16.msra.mxu1 %v1289_v56  ;;  %v3136_v56 = vld [vmem:[%s4042_s28 + $0x80] ss:$12 sps:$4 sm:$0xff]  }
 0x5b0   : > { %2828 = vmatprep.subr.bf16.mxu1 %v3596_v26 }
 0x5b3   : > { %2829 = vmatpush3.bf16.msra.mxu1 %v1288_v14  ;;  %v3137_v14 = vld [vmem:[%s4042_s28 + $0x60] ss:$12 sps:$4 sm:$0xff]  }
 0x5b4   : > { %2830 = vmatprep.subr.bf16.mxu1 %v3596_v26 }
 0x5b7   : > { %2831 = vmatpush3.bf16.msra.mxu1 %v1287_v12  ;;  %v3141_v12 = vld [vmem:[%s4042_s28 + $0x48] ss:$12 sps:$4 sm:$0xff]  }
 0x5b8   : > { %2832 = vmatprep.subr.bf16.mxu1 %v3596_v26 }
 0x5bb   : > { %2833 = vmatpush3.bf16.msra.mxu1 %v1286_v11  ;;  %v3145_v11 = vld [vmem:[%s4042_s28 + $0x30] ss:$12 sps:$4 sm:$0xff]  }
 0x5bc   : > { %2834 = vmatprep.subr.bf16.mxu1 %v3596_v26 }
 0x5bf   : > { %2835 = vmatpush3.bf16.msra.mxu1 %v1285_v9  ;;  %v3149_v9 = vld [vmem:[%s4042_s28 + $0x18] ss:$12 sps:$4 sm:$0xff]  }
 0x5c0   : > { %1639 = vmatprep.subr.bf16.mxu1 %v3127_v51  ;;  %v3170_v51 = vld [vmem:[%s4044_s25 + $0x58] sm:$0xff]  }
 0x662   : > { %v1262_v24 = vpop.f32.mrf.mxu1 }
 0x663   : > { %3185 = vrcp.f32 %v1262_v24 }
 0x664   : > { %v2819_v25 = vpop.f32.mrf.mxu1 }
 0x670   : > { %v3186_v27 = vpop.eup %3185 }
 0x671   : > { %v1267_v28 = vmul.f32 %v3186_v27, %v4206_v3  ;;  %v3128_v3 = vld [vmem:[%s4042_s28 + $0xb0] ss:$12 sps:$4 sm:$0xff]  }
 0x673   : > { %v1284_v29 = vpack.c.bf16 %v1267_v28, %v1267_v28 }
 0x675   : > { %2837 = vmatmul.mubr.bf16.vlgmr.msra.gmra.mxu1 %v1284_v29 }
 0x676   : > { %1671 = vmatprep.mubr.bf16.mxu1 %v3597_v50  ;;  %v4253_v50 = vsub.s32 3, %v4074_v32  ;;  %1640 = vmatpush1.bf16.msra.mxu1 %v3125_v49  ;;  %v3168_v49 = vld [vmem:[%s4044_s25 + $0x20] sm:$0xff]  }
 0x677   : > { %1641 = vmatprep.subr.bf16.mxu1 %v3131_v52  ;;  %v3171_v52 = vld [vmem:[%s4044_s25 + $0x18] sm:$0xff]  }
 0x678   : > { %v1442_v39 = vrot.slane %v4120_v20, %v4253_v50  ;;  %v1464_v27 = vrot.slane %v4117_v63, %v4253_v50 }
 0x735   : > { %v1327_v37 = vpop.f32.mrf.mxu1 }
 0x736   : > { %v1349_v38 = vpack.c.bf16 %v1327_v37, %v1327_v37  ;;  %v3157_v37 = vld [vmem:[%s4044_s25 + $0xb8] sm:$0xff]  }
 0x737   : > { %v2838_v40 = vpop.f32.mrf.mxu1 }
 0x738   : > { %2857 = vmatmul.mubr.bf16.vlgmr.msra.gmra.mxu0 %v1349_v38  ;;  %v3158_v38 = vld [vmem:[%s4044_s25 + $0x78] sm:$0xff]  }
 0x739   : > { %v1330_v41 = vpop.f32.mrf.mxu1  ;;  %2876 = vmatprep.mubr.msk.bf16.mxu0 %vm3598_vm1, %v3596_v26  ;;  %2861 = vmatpush3.bf16.msra.mxu0 %v3128_v3  ;;  %v3159_v40 = vld [vmem:[%s4044_s25 + $0x38] sm:$0xff]  }
 0x73a   : > { %2862 = vmatprep.subr.bf16.mxu0 %v3596_v26  ;;  %v3161_v41 = vld [vmem:[%s4044_s25 + $0x70] sm:$0xff]   ;;  %v3169_v3 = vld [vmem:[%s4044_s25 + $0x98] sm:$0xff]  }
 0x73b   : > { %v2839_v42 = vpop.f32.mrf.mxu1 }
 0x73c   : > { %v3160_v42 = vld [vmem:[%s4044_s25 + $0xb0] sm:$0xff]  }
 0x73d   : > { %2863 = vmatpush3.bf16.msra.mxu0 %v3132_v53  ;;  %v3173_v53 = vld [vmem:[%s4044_s25 + $0x50] sm:$0xff]  }
 0x73e   : > { %2864 = vmatprep.subr.bf16.mxu0 %v3596_v26 }
 0x741   : > { %2865 = vmatpush3.bf16.msra.mxu0 %v3136_v56  ;;  %v1502_v56 = vrot.slane %v4117_v63, %v4077_v33 }
 0x742   : > { %2866 = vmatprep.subr.bf16.mxu0 %v3596_v26 }
 0x745   : > { %2867 = vmatpush3.bf16.msra.mxu0 %v3140_v58  ;;  %v1506_v58 = vrot.slane %v4120_v20, %v4077_v33 }
 0x746   : > { %2868 = vmatprep.subr.bf16.mxu0 %v3596_v26 }
 0x749   : > { %2869 = vmatpush3.bf16.msra.mxu0 %v3144_v59 }
 0x74a   : > { %2870 = vmatprep.subr.bf16.mxu0 %v3596_v26 }
 0x74d   : > { %2871 = vmatpush3.bf16.msra.mxu0 %v3148_v10 }
 0x74e   : > { %2872 = vmatprep.subr.bf16.mxu0 %v3596_v26 }
 0x751   : > { %2873 = vmatpush3.bf16.msra.mxu0 %v3152_v60 }
 0x752   : > { %2874 = vmatprep.subr.bf16.mxu0 %v3596_v26 }
 0x755   : > { %2875 = vmatpush3.bf16.msra.mxu0 %v3156_v7 }
 0x756   : > { %2880 = vmatprep.subr.bf16.mxu0 %v3596_v26 }
 0x7f8   : > { %v1432_v43 = vpop.f32.mrf.mxu0 }
 0x7f9   : > { %v1438_v44 = vadd.f32 %v1432_v43, %v4062_v23  ;;  %v3129_v23 = vld [vmem:[%s4042_s28 + $0x90] ss:$12 sps:$4 sm:$0xff]   ;;  %v3164_v43 = vld [vmem:[%s4044_s25 + $0x68] sm:$0xff]  }
 0x7fa   : > { %v2858_v45 = vpop.f32.mrf.mxu0  ;;  %1642 = vmatpush1.bf16.msra.mxu1 %v3129_v23  ;;  %v3172_v23 = vld [vmem:[%s4044_s25 + $0x90] sm:$0xff]  }
 0x7fb   : > { %v4258_v47 = vadd.f32 %v1442_v39, %v1438_v44  ;;  %1643 = vmatprep.subr.bf16.mxu1 %v3135_v17  ;;  %v3162_v39 = vld [vmem:[%s4044_s25 + $0x30] sm:$0xff]   ;;  %v3163_v44 = vld [vmem:[%s4044_s25 + $0xa8] sm:$0xff]   ;;  %v3180_v17 = vld [vmem:[%s4044_s25] sm:$0xff]  }
 0x7fc   : > { %v1435_v34 = vpop.f32.mrf.mxu0  ;;  %v3165_v45 = vld [vmem:[%s4044_s25 + $0x28] sm:$0xff]  }
 0x7fd   : > { %1444 = vadd.xlane.f32.xlu1 %v4258_v47  ;;  %v3167_v34 = vld [vmem:[%s4044_s25 + $0x60] sm:$0xff]  }
 0x7fe   : > { %v2859_v48 = vpop.f32.mrf.mxu0  ;;  %1644 = vmatpush1.bf16.msra.mxu1 %v3133_v16  ;;  %v3178_v16 = vld [vmem:[%s4044_s25 + $0x80] sm:$0xff]  }
 0x7ff   : > { %1645 = vmatprep.subr.bf16.mxu1 %v3139_v57  ;;  %v3166_v48 = vld [vmem:[%s4044_s25 + $0xa0] sm:$0xff]   ;;  %v1510_v57 = vrot.slane %v4199_v46, %v4077_v33 }
 0x802   : > { %1646 = vmatpush1.bf16.msra.mxu1 %v3137_v14 }
 0x803   : > { %1647 = vmatprep.subr.bf16.mxu1 %v3143_v15 }
 0x806   : > { %1648 = vmatpush1.bf16.msra.mxu1 %v3141_v12 }
 0x807   : > { %1649 = vmatprep.subr.bf16.mxu1 %v3147_v13 }
 0x80a   : > { %1650 = vmatpush1.bf16.msra.mxu1 %v3145_v11 }
 0x80b   : > { %1651 = vmatprep.subr.bf16.mxu1 %v3151_v8 }
 0x80e   : > { %1652 = vmatpush1.bf16.msra.mxu1 %v3149_v9 }
 0x80f   : > { %1653 = vmatprep.subr.bf16.mxu1 %v3155_v6 }
 0x812   : > { %1654 = vmatpush1.bf16.msra.mxu1 %v3153_v61 }
 0x813   : > { %2697 = vmatprep.subr.bf16.mxu1 %v3158_v38 }
 0x886   : > { %v1445_v54 = vpop.xlane.xlu1 %1444 }
 0x887   : > { %v1446_v35 = vmul.f32 0.010416667, %v1445_v54  ;;  %v3174_v54 = vld [vmem:[%s4044_s25 + $0x10] sm:$0xff]  }
 0x889   : > { %v1447_v18 = vsub.f32 %v4258_v47, %v1446_v35  ;;  %v3176_v35 = vld [vmem:[%s4044_s25 + $0x48] sm:$0xff]  }
 0x88b   : > { %v1448_v19 = vmul.f32 %v1447_v18, %v4081_v36 }
 0x88d   : > { %v1449_v55 = vmul.f32 %v1448_v19, %v1448_v19  ;;  %v3177_v19 = vld [vmem:[%s4044_s25 + $0x8] sm:$0xff]  }
 0x88f   : > { %1450 = vadd.xlane.f32.xlu0 %v1449_v55  ;;  %v3179_v55 = vld [vmem:[%s4044_s25 + $0x40] sm:$0xff]  }
 0x918   : > { %v1451_v4 = vpop.xlane.xlu0 %1450 }
 0x919   : > { %v1452_v5 = vmul.f32 0.010416667, %v1451_v4 }
 0x91b   : > { %v1453_v21 = vadd.f32 1e-05, %v1452_v5 }
 0x91d   : > { %3187 = vrsqrt.f32 %v1453_v21 }
 0x92a   : > { %v3188_v24 = vpop.eup %3187 }
 0x92b   : > { %v1455_v25 = vmul.f32 %v3188_v24, %v1447_v18  ;;  %v3175_v18 = vld [vmem:[%s4044_s25 + $0x88] sm:$0xff]  }
 0x92d   : > { %v1460_v28 = vmul.f32 %v1459_v22, %v1455_v25 }
 0x92f   : > { %v1465_v29 = vadd.f32 %v1464_v27, %v1460_v28 }
 0x931   : > { %v1498_v31 = vpack.c.bf16 %v1465_v29, %v1465_v29 }
 0x933   : > { %1672 = vmatmul.mubr.bf16.vlgmr.msra.gmra.mxu1 %v1498_v31  ;;  %2877 = vmatmul.mubr.bf16.vlgmr.msra.gmra.mxu0 %v1498_v31 }
 0x934   : > { %2896 = vmatprep.mubr.msk.bf16.mxu0 %vm3598_vm1, %v3596_v26  ;;  %2881 = vmatpush3.bf16.msra.mxu0 %v3157_v37 }
 0x935   : > { %2698 = vmatpush3.bf16.msra.mxu1 %v3159_v40  ;;  %2882 = vmatprep.subr.bf16.mxu0 %v3596_v26 }
 0x936   : > { %2699 = vmatprep.subr.bf16.mxu1 %v3161_v41 }
 0x938   : > { %2883 = vmatpush3.bf16.msra.mxu0 %v3160_v42 }
 0x939   : > { %2700 = vmatpush3.bf16.msra.mxu1 %v3162_v39  ;;  %2884 = vmatprep.subr.bf16.mxu0 %v3596_v26 }
 0x93a   : > { %2701 = vmatprep.subr.bf16.mxu1 %v3164_v43 }
 0x93c   : > { %2885 = vmatpush3.bf16.msra.mxu0 %v3163_v44 }
 0x93d   : > { %2702 = vmatpush3.bf16.msra.mxu1 %v3165_v45  ;;  %2886 = vmatprep.subr.bf16.mxu0 %v3596_v26 }
 0x93e   : > { %2703 = vmatprep.subr.bf16.mxu1 %v3167_v34 }
 0x940   : > { %2887 = vmatpush3.bf16.msra.mxu0 %v3166_v48 }
 0x941   : > { %2704 = vmatpush3.bf16.msra.mxu1 %v3168_v49  ;;  %2888 = vmatprep.subr.bf16.mxu0 %v3596_v26 }
 0x942   : > { %2705 = vmatprep.subr.bf16.mxu1 %v3170_v51 }
 0x944   : > { %2889 = vmatpush3.bf16.msra.mxu0 %v3169_v3 }
 0x945   : > { %2706 = vmatpush3.bf16.msra.mxu1 %v3171_v52  ;;  %2890 = vmatprep.subr.bf16.mxu0 %v3596_v26 }
 0x946   : > { %2707 = vmatprep.subr.bf16.mxu1 %v3173_v53 }
 0x948   : > { %2891 = vmatpush3.bf16.msra.mxu0 %v3172_v23 }
 0x949   : > { %2708 = vmatpush3.bf16.msra.mxu1 %v3174_v54  ;;  %2892 = vmatprep.subr.bf16.mxu0 %v3596_v26 }
 0x94a   : > { %2709 = vmatprep.subr.bf16.mxu1 %v3176_v35 }
 0x94c   : > { %2893 = vmatpush3.bf16.msra.mxu0 %v3175_v18  ;;  %v1801_v18 = vrot.slane %v4199_v46, %v4253_v50 }
 0x94d   : > { %2710 = vmatpush3.bf16.msra.mxu1 %v3177_v19  ;;  %2894 = vmatprep.subr.bf16.mxu0 %v3596_v26 }
 0x94e   : > { %2711 = vmatprep.subr.bf16.mxu1 %v3179_v55 }
 0x950   : > { %2895 = vmatpush3.bf16.msra.mxu0 %v3178_v16 }
 0x951   : > { %2712 = vmatpush3.bf16.msra.mxu1 %v3180_v17 }
 0x9f3   : > { %v1673_v14 = vpop.f32.mrf.mxu1  ;;  %v1714_v15 = vpop.f32.mrf.mxu0 }
 0x9f4   : > { %v1674_v59 = vadd.f32 %v1673_v14, %v1502_v56  ;;  %v1715_v12 = vadd.f32 %v1714_v15, %v1510_v57 }
 0x9f5   : > { %v1675_v13 = vpop.f32.mrf.mxu1  ;;  %v2878_v10 = vpop.f32.mrf.mxu0 }
 0x9f6   : > { %v1723_v26 = vmul.f32 0.044715, %v1674_v59  ;;  %v1725_v11 = vmul.f32 0.044715, %v1715_v12  ;;  %v1676_v8 = vadd.f32 %v1675_v13, %v1506_v58  ;;  %v1722_v40 = vmul.f32 0.5, %v1715_v12 }
 0x9f7   : > { %v1677_v60 = vpop.f32.mrf.mxu1  ;;  %v1717_v9 = vpop.f32.mrf.mxu0  ;;  %v1720_v39 = vmul.f32 0.5, %v1674_v59 }
 0x9f8   : > { %v1726_v6 = vmul.f32 %v1723_v26, %v1674_v59  ;;  %v1728_v7 = vmul.f32 %v1725_v11, %v1715_v12  ;;  %v1724_v63 = vmul.f32 0.044715, %v1676_v8  ;;  %v1721_v45 = vmul.f32 0.5, %v1676_v8 }
 0x9f9   : > { %v1678_v61 = vpop.f32.mrf.mxu1  ;;  %v2879_v4 = vpop.f32.mrf.mxu0 }
 0x9fa   : > { %v1729_v5 = vmul.f32 %v1726_v6, %v1674_v59  ;;  %v1731_v21 = vmul.f32 %v1728_v7, %v1715_v12  ;;  %v1727_v22 = vmul.f32 %v1724_v63, %v1676_v8 }
 0x9fc   : > { %v1732_v20 = vadd.f32 %v1729_v5, %v1674_v59  ;;  %v1734_v24 = vadd.f32 %v1731_v21, %v1715_v12  ;;  %v1730_v25 = vmul.f32 %v1727_v22, %v1676_v8 }
 0x9fe   : > { %v1735_v27 = vmul.f32 0.7978846, %v1732_v20  ;;  %v1737_v28 = vmul.f32 0.7978846, %v1734_v24  ;;  %v1733_v29 = vadd.f32 %v1730_v25, %v1676_v8 }
 0xa00   : > { %3189 = vtanh.f32 %v1737_v28  ;;  %v1736_v31 = vmul.f32 0.7978846, %v1733_v29 }
 0xa01   : > { %3191 = vtanh.f32 %v1735_v27 }
 0xa02   : > { %3193 = vtanh.f32 %v1736_v31 }
 0xa0d   : > { %v3190_v37 = vpop.eup %3189 }
 0xa0e   : > { %v3192_v38 = vpop.eup %3191  ;;  %v1743_v41 = vadd.f32 1.0, %v3190_v37 }
 0xa0f   : > { %v3194_v42 = vpop.eup %3193  ;;  %v1741_v43 = vadd.f32 1.0, %v3192_v38 }
 0xa10   : > { %v1746_v44 = vmul.f32 %v1743_v41, %v1722_v40  ;;  %v1742_v34 = vadd.f32 1.0, %v3194_v42 }
 0xa11   : > { %v1744_v48 = vmul.f32 %v1741_v43, %v1720_v39 }
 0xa12   : > { %v1797_v49 = vpack.c.bf16 %v1746_v44, %v1746_v44  ;;  %v1745_v51 = vmul.f32 %v1742_v34, %v1721_v45 }
 0xa13   : > { %v1795_v52 = vpack.c.bf16 %v1744_v48, %v1744_v48 }
 0xa14   : > { %2897 = vmatmul.mubr.bf16.vlgmr.msra.gmra.mxu0 %v1797_v49  ;;  %v1796_v3 = vpack.c.bf16 %v1745_v51, %v1745_v51 }
 0xa16   : > { %1978 = vmatprep.mubr.bf16.mxu1 %v1796_v3 }
 0xa17   : > { %1979 = vmatmul.mubr.bf16.vlgmr.msra.gmra.mxu1 %v1795_v52 }
 0xad4   : > { %v2020_v53 = vpop.f32.mrf.mxu0 }
 0xad6   : > { %v2898_v23 = vpop.f32.mrf.mxu0 }
 0xad7   : > { %v2713_v54 = vpop.f32.mrf.mxu1 }
 0xad8   : > { %v2023_v35 = vpop.f32.mrf.mxu0 }
 0xad9   : > { %v2714_v19 = vpop.f32.mrf.mxu1 }
 0xada   : > { %v2715_v55 = vadd.f32 %v2714_v19, %v2713_v54  ;;  %v2899_v16 = vpop.f32.mrf.mxu0 }
 0xadb   : > { %v2716_v17 = vpop.f32.mrf.mxu1 }
 0xadc   : > { %v1981_v56 = vadd.f32 %v2715_v55, %v1801_v18 }
 0xadd   : > { %v2717_v57 = vpop.f32.mrf.mxu1 }
 0xade   : > { %v2021_v58 = vadd.f32 %v2020_v53, %v1981_v56  ;;  %2031 = sbr.rel (%p2594_p7) target bundleno = 3826 (0xef2), region = 124 }
 0xae0   : > { %v2026_v14 = vadd.f32 %v2021_v58, %v4258_v47 }
 0xae2   : > { %2027 = vst [vmem:[#allocation2] sm:$0xff] %v2026_v14 }
 0xae3   : > { %2032 = vadd.xlane.f32.xlu0 %v2026_v14  ;;  %v2070_v15 = vld [vmem:[#allocation11 + $0x78] sm:$0xff]  ;;  %v3599_v59 = vmov 0.0   ;;  %v2069_v12 = vld [vmem:[#allocation11 + $0x70] sm:$0xff]  ;;  %v2068_v11 = vld [vmem:[#allocation11 + $0x68] sm:$0xff]  ;;  %vm3600_vm2 = vmmov 0   ;;  %v2047_v29 = vrot.slane %v4002_v1, %v4163_v30  ;;  %v2052_v38 = vrot.slane %v4000_v0, %v4077_v33 }
 0xae4   : > { %2900 = vmatprep.subr.mxu0 %v3599_v59  ;;  %2280 = vmatprep.mubr.f32.mxu1 %v3599_v59  ;;  %v2067_v8 = vld [vmem:[#allocation11 + $0x60] sm:$0xff]  ;;  %v2066_v60 = vld [vmem:[#allocation11 + $0x58] sm:$0xff]  ;;  %v2065_v9 = vld [vmem:[#allocation11 + $0x50] sm:$0xff]  ;;  %v2074_v39 = vrot.slane %v4002_v1, %v4114_v62 }
 0xae5   : > { %2901 = vmatpush3.msra.mxu0 %v2070_v15  ;;  %v2064_v6 = vld [vmem:[#allocation11 + $0x48] sm:$0xff]  ;;  %2932 = vmatprep.mubr.msk.f32.mxu0 %vm3600_vm2, %v3599_v59  ;;  %v2063_v7 = vld [vmem:[#allocation11 + $0x40] sm:$0xff]  ;;  %v2062_v63 = vld [vmem:[#allocation11 + $0x38] sm:$0xff] }
 0xae6   : > { %2902 = vmatprep.subr.mxu0 %v3599_v59  ;;  %v2061_v61 = vld [vmem:[#allocation11 + $0x30] sm:$0xff]  ;;  %v2060_v4 = vld [vmem:[#allocation11 + $0x28] sm:$0xff]  ;;  %v2059_v5 = vld [vmem:[#allocation11 + $0x20] sm:$0xff] }
 0xae7   : > { %2903 = vmatpush3.msra.mxu0 %v2069_v12  ;;  %v2058_v21 = vld [vmem:[#allocation11 + $0x18] sm:$0xff]  ;;  %v2057_v22 = vld [vmem:[#allocation11 + $0x10] sm:$0xff]  ;;  %v2056_v20 = vld [vmem:[#allocation11 + $0x8] sm:$0xff] }
 0xae8   : > { %2904 = vmatprep.subr.mxu0 %v3599_v59  ;;  %v2055_v24 = vld [vmem:[#allocation11] sm:$0xff]  ;;  %v2207_v51 = vld [vmem:[#allocation12 + $0xf8] sm:$0xff]  ;;  %v2205_v3 = vld [vmem:[#allocation12 + $0xe8] sm:$0xff] }
 0xae9   : > { %2905 = vmatpush3.msra.mxu0 %v2068_v11  ;;  %2216 = vmatprep.subr.mxu1 %v2207_v51  ;;  %v2204_v52 = vld [vmem:[#allocation12 + $0xe0] sm:$0xff]  ;;  %v2203_v62 = vld [vmem:[#allocation12 + $0xd8] sm:$0xff]  ;;  %v2202_v53 = vld [vmem:[#allocation12 + $0xd0] sm:$0xff] }
 0xaea   : > { %2906 = vmatprep.subr.mxu0 %v3599_v59  ;;  %v2201_v23 = vld [vmem:[#allocation12 + $0xc8] sm:$0xff]  ;;  %v2200_v54 = vld [vmem:[#allocation12 + $0xc0] sm:$0xff]  ;;  %v2199_v35 = vld [vmem:[#allocation12 + $0xb8] sm:$0xff] }
 0xaeb   : > { %2907 = vmatpush3.msra.mxu0 %v2067_v8  ;;  %v2198_v18 = vld [vmem:[#allocation12 + $0xb0] sm:$0xff]  ;;  %v2196_v19 = vld [vmem:[#allocation12 + $0xa0] sm:$0xff]  ;;  %v2195_v55 = vld [vmem:[#allocation12 + $0x98] sm:$0xff] }
 0xaec   : > { %2908 = vmatprep.subr.mxu0 %v3599_v59  ;;  %v2194_v16 = vld [vmem:[#allocation12 + $0x90] sm:$0xff]  ;;  %v2193_v17 = vld [vmem:[#allocation12 + $0x88] sm:$0xff]  ;;  %v2192_v56 = vld [vmem:[#allocation12 + $0x80] sm:$0xff] }
 0xaed   : > { %2909 = vmatpush3.msra.mxu0 %v2066_v60  ;;  %v2191_v57 = vld [vmem:[#allocation12 + $0x78] sm:$0xff]  ;;  %v2190_v58 = vld [vmem:[#allocation12 + $0x70] sm:$0xff]  ;;  %v2188_v15 = vld [vmem:[#allocation12 + $0x60] sm:$0xff] }
 0xaee   : > { %2910 = vmatprep.subr.mxu0 %v3599_v59  ;;  %v2186_v12 = vld [vmem:[#allocation12 + $0x50] sm:$0xff]  ;;  %v2180_v11 = vld [vmem:[#allocation12 + $0x20] sm:$0xff]  ;;  %v2179_v8 = vld [vmem:[#allocation12 + $0x18] sm:$0xff] }
 0xaef   : > { %2911 = vmatpush3.msra.mxu0 %v2065_v9  ;;  %v2178_v60 = vld [vmem:[#allocation12 + $0x10] sm:$0xff]  ;;  %v2177_v9 = vld [vmem:[#allocation12 + $0x8] sm:$0xff] }
 0xaf0   : > { %2912 = vmatprep.subr.mxu0 %v3599_v59 }
 0xaf1   : > { %2913 = vmatpush3.msra.mxu0 %v2064_v6  ;;  %v2176_v6 = vld [vmem:[#allocation12] sm:$0xff] }
 0xaf2   : > { %2914 = vmatprep.subr.mxu0 %v3599_v59 }
 0xaf3   : > { %2915 = vmatpush3.msra.mxu0 %v2063_v7 }
 0xaf4   : > { %2916 = vmatprep.subr.mxu0 %v3599_v59 }
 0xaf5   : > { %2917 = vmatpush3.msra.mxu0 %v2062_v63 }
 0xaf6   : > { %2918 = vmatprep.subr.mxu0 %v3599_v59 }
 0xaf7   : > { %2919 = vmatpush3.msra.mxu0 %v2061_v61 }
 0xaf8   : > { %2920 = vmatprep.subr.mxu0 %v3599_v59 }
 0xaf9   : > { %2921 = vmatpush3.msra.mxu0 %v2060_v4  ;;  %v2160_v4 = vrot.slane %v4000_v0, %v4253_v50 }
 0xafa   : > { %2922 = vmatprep.subr.mxu0 %v3599_v59 }
 0xafb   : > { %2923 = vmatpush3.msra.mxu0 %v2059_v5 }
 0xafc   : > { %2924 = vmatprep.subr.mxu0 %v3599_v59 }
 0xafd   : > { %2925 = vmatpush3.msra.mxu0 %v2058_v21 }
 0xafe   : > { %2926 = vmatprep.subr.mxu0 %v3599_v59 }
 0xaff   : > { %2927 = vmatpush3.msra.mxu0 %v2057_v22  ;;  %v2165_v22 = vrot.slane %v4002_v1, %v4253_v50 }
 0xb00   : > { %2928 = vmatprep.subr.mxu0 %v3599_v59 }
 0xb01   : > { %2929 = vmatpush3.msra.mxu0 %v2056_v20 }
 0xb02   : > { %2930 = vmatprep.subr.mxu0 %v3599_v59  ;;  %v2187_v59 = vld [vmem:[#allocation12 + $0x58] sm:$0xff] }
 0xb03   : > { %2931 = vmatpush3.msra.mxu0 %v2055_v24 }
 0xb6c   : > { %v2033_v46 = vpop.xlane.xlu0 %2032 }
 0xb6d   : > { %v2034_v13 = vmul.f32 0.010416667, %v2033_v46  ;;  %v2185_v46 = vld [vmem:[#allocation12 + $0x48] sm:$0xff] }
 0xb6f   : > { %v2035_v10 = vsub.f32 %v2026_v14, %v2034_v13  ;;  %v2189_v14 = vld [vmem:[#allocation12 + $0x68] sm:$0xff]  ;;  %v2184_v13 = vld [vmem:[#allocation12 + $0x40] sm:$0xff] }
 0xb71   : > { %v2036_v26 = vmul.f32 %v2035_v10, %v4081_v36 }
 0xb73   : > { %v2037_v47 = vmul.f32 %v2036_v26, %v2036_v26  ;;  %v2182_v26 = vld [vmem:[#allocation12 + $0x30] sm:$0xff] }
 0xb75   : > { %2038 = vadd.xlane.f32.xlu0 %v2037_v47  ;;  %v2181_v47 = vld [vmem:[#allocation12 + $0x28] sm:$0xff] }
 0xbfe   : > { %v2039_v25 = vpop.xlane.xlu0 %2038 }
 0xbff   : > { %v2040_v27 = vmul.f32 0.010416667, %v2039_v25 }
 0xc01   : > { %v2041_v28 = vadd.f32 1e-05, %v2040_v27 }
 0xc03   : > { %3195 = vrsqrt.f32 %v2041_v28 }
 0xc10   : > { %v3196_v31 = vpop.eup %3195 }
 0xc11   : > { %v2043_v37 = vmul.f32 %v3196_v31, %v2035_v10  ;;  %v2183_v10 = vld [vmem:[#allocation12 + $0x38] sm:$0xff] }
 0xc13   : > { %v2048_v40 = vmul.f32 %v2047_v29, %v2043_v37 }
 0xc15   : > { %v2053_v41 = vadd.f32 %v2052_v38, %v2048_v40 }
 0xc17   : > { %v2054_v42 = vadd.f32 %v2053_v41, %v4004_v2  ;;  %v2206_v2 = vld [vmem:[#allocation12 + $0xf0] sm:$0xff] }
 0xc18   : > { %2217 = vmatpush1.msra.mxu1 %v2206_v2 }
 0xc19   : > { %2933 = vmatmul.mubr.f32.vlgmr.msra.gmra.mxu0 %v2054_v42  ;;  %2218 = vmatprep.subr.mxu1 %v2205_v3  ;;  %v2210_v42 = vsub.s32 4, %v4074_v32 }
 0xc1a   : > { %2219 = vmatpush1.msra.mxu1 %v2204_v52 }
 0xc1b   : > { %2220 = vmatprep.subr.mxu1 %v2203_v62 }
 0xc1c   : > { %2221 = vmatpush1.msra.mxu1 %v2202_v53 }
 0xc1d   : > { %2222 = vmatprep.subr.mxu1 %v2201_v23 }
 0xc1e   : > { %2223 = vmatpush1.msra.mxu1 %v2200_v54 }
 0xc1f   : > { %2224 = vmatprep.subr.mxu1 %v2199_v35 }
 0xc20   : > { %2225 = vmatpush1.msra.mxu1 %v2198_v18 }
 0xcd9   : > { %v2141_v43 = vpop.f32.mrf.mxu0 }
 0xcda   : > { %v2142_v44 = vadd.f32 %v2141_v43, %v2074_v39  ;;  %v2211_v39 = vrot.slane %v4000_v0, %v2210_v42  ;;  %v2215_v43 = vrot.slane %v4002_v1, %v2210_v42 }
 0xcdb   : > { %v2934_v45 = vpop.f32.mrf.mxu0 }
 0xcdc   : > { %2145 = vadd.xlane.f32.xlu1 %v2142_v44 }
 0xd65   : > { %v2146_v34 = vpop.xlane.xlu1 %2145 }
 0xd66   : > { %v2147_v48 = vmul.f32 0.010416667, %v2146_v34 }
 0xd68   : > { %v4350_v30 = vsub.f32 %v2142_v44, %v2147_v48 }
 0xd6a   : > { %v2149_v49 = vmul.f32 %v4350_v30, %v4081_v36  ;;  %v2197_v36 = vld [vmem:[#allocation12 + $0xa8] sm:$0xff] }
 0xd6b   : > { %2226 = vmatprep.subr.mxu1 %v2197_v36 }
 0xd6c   : > { %v2150_v33 = vmul.f32 %v2149_v49, %v2149_v49  ;;  %2227 = vmatpush1.msra.mxu1 %v2196_v19 }
 0xd6d   : > { %2228 = vmatprep.subr.mxu1 %v2195_v55 }
 0xd6e   : > { %2151 = vadd.xlane.f32.xlu1 %v2150_v33  ;;  %2229 = vmatpush1.msra.mxu1 %v2194_v16 }
 0xd6f   : > { %2230 = vmatprep.subr.mxu1 %v2193_v17 }
 0xd70   : > { %2231 = vmatpush1.msra.mxu1 %v2192_v56 }
 0xd71   : > { %2232 = vmatprep.subr.mxu1 %v2191_v57 }
 0xd72   : > { %2233 = vmatpush1.msra.mxu1 %v2190_v58 }
 0xd73   : > { %2234 = vmatprep.subr.mxu1 %v2189_v14 }
 0xd74   : > { %2235 = vmatpush1.msra.mxu1 %v2188_v15 }
 0xd75   : > { %2236 = vmatprep.subr.mxu1 %v2187_v59 }
 0xd76   : > { %2237 = vmatpush1.msra.mxu1 %v2186_v12 }
 0xd77   : > { %2238 = vmatprep.subr.mxu1 %v2185_v46 }
 0xd78   : > { %2239 = vmatpush1.msra.mxu1 %v2184_v13 }
 0xd79   : > { %2240 = vmatprep.subr.mxu1 %v2183_v10 }
 0xd7a   : > { %2241 = vmatpush1.msra.mxu1 %v2182_v26 }
 0xd7b   : > { %2242 = vmatprep.subr.mxu1 %v2181_v47 }
 0xd7c   : > { %2243 = vmatpush1.msra.mxu1 %v2180_v11 }
 0xd7d   : > { %2244 = vmatprep.subr.mxu1 %v2179_v8 }
 0xd7e   : > { %2245 = vmatpush1.msra.mxu1 %v2178_v60 }
 0xd7f   : > { %2246 = vmatprep.subr.mxu1 %v2177_v9 }
 0xd80   : > { %2247 = vmatpush1.msra.mxu1 %v2176_v6 }
 0xdf7   : > { %v2152_v7 = vpop.xlane.xlu1 %2151 }
 0xdf8   : > { %v2153_v63 = vmul.f32 0.010416667, %v2152_v7 }
 0xdfa   : > { %v2154_v61 = vadd.f32 1e-05, %v2153_v63 }
 0xdfc   : > { %3197 = vrsqrt.f32 %v2154_v61 }
 0xe09   : > { %v3198_v5 = vpop.eup %3197 }
 0xe0a   : > { %v2156_v21 = vmul.f32 %v3198_v5, %v4350_v30 }
 0xe0c   : > { %v2161_v20 = vmul.f32 %v2160_v4, %v2156_v21 }
 0xe0e   : > { %v2166_v24 = vadd.f32 %v2165_v22, %v2161_v20 }
 0xe10   : > { %v2168_v25 = vmul.f32 0.044715, %v2166_v24  ;;  %v2167_v38 = vmul.f32 0.5, %v2166_v24 }
 0xe12   : > { %v2169_v27 = vmul.f32 %v2168_v25, %v2166_v24 }
 0xe14   : > { %v2170_v28 = vmul.f32 %v2169_v27, %v2166_v24 }
 0xe16   : > { %v2171_v29 = vadd.f32 %v2170_v28, %v2166_v24 }
 0xe18   : > { %v2172_v31 = vmul.f32 0.7978846, %v2171_v29 }
 0xe1a   : > { %3199 = vtanh.f32 %v2172_v31 }
 0xe27   : > { %v3200_v37 = vpop.eup %3199 }
 0xe28   : > { %v2174_v40 = vadd.f32 1.0, %v3200_v37 }
 0xe2a   : > { %v2175_v41 = vmul.f32 %v2174_v40, %v2167_v38 }
 0xe2c   : > { %2281 = vmatmul.mubr.f32.vlgmr.msra.gmra.mxu1 %v2175_v41 }
 0xeec   : > { %v2282_v50 = vpop.f32.mrf.mxu1 }
 0xeed   : > { %v2283_v44 = vadd.f32 %v2282_v50, %v2211_v39 }
 0xeee   : > { %v2284_v45 = vpop.f32.mrf.mxu1 }
 0xeef   : > { %2287 = vst [vmem:[%s4485_s19] sm:$0xff] %v2283_v44  ;;  %v2285_v34 = vadd.f32 %v2284_v45, %v2215_v43 }
 0xef1   : > { %2288 = vst [vmem:[%s4485_s19 + $0x8] sm:$0xff] %v2285_v34 }
 0xef2 PF: > { %s4486_s17 = sld [smem:[#allocation28_spill]]  ;;  %s3601_s13 = smov [#allocation19]  }
 0xef3   : > { %s2296_s14 = sshll.u32 %s3601_s13, 4  ;;  %s2297_s14 = int_to_ptr.vmem [resolvable:$true] %s2296_s14 }
 0xef4   : > { %s3497_s20 = scalar_lea.vmem %s2297_s14, 128  ;;  %p3504_p3 = scmp.lt.s32.totalorder %s2297_s14, %s2297_s14 }
 0xef5   : > { %p3498_p5 = scmp.ne.s32.totalorder %s2297_s14, %s3497_s20  ;;  %p3505_p8 = scmp.lt.s32.totalorder %s3497_s20, %s3497_s20 }
 0xef7   : > { %p3506_p1 = por %p3505_p8, %p3504_p3 }
 0xef8   : > { %p3031_p4 = scmp.eq.s32.totalorder %s4486_s17, 11 }
 0xefa   : > { %p3499_p6 = pnand %p3498_p5, %p3031_p4 }
 0xefc   : > { %p3500_p11 = pneg %p3499_p6 }
 0xefe   : > { %p3507_p9 = pnand %p3506_p1, %p3500_p11 }
 0xf00   : > { %3510 = shalt.err (!%p3507_p9)
}
 0xf01   : > { %s4487_s28 = sld [smem:[#allocation37_spill]] }
 0xf07   : > { %2980 = dma.vmem_to_hbm [thread:$0]  (%p3031_p4), %s2297_s14, 128, %s4487_s28, [#allocation5]  }
 0xf08   : > { %3558 = dma.done.wait (%p3031_p4), [#allocation5], 128  }
 0xf09   : > { %3560 = vsyncadd (%p3031_p4), [#allocation5], 4294967168 }
 0xf0a PF: > { %s4488_s16 = sld [smem:[#allocation30_spill]] }
 0xf0b   : > { %s4489_s29 = sld [smem:[#allocation26_spill]] }
 0xf0c   : > { %s4490_s30 = sld [smem:[#allocation27_spill]] }
 0xf0d   : > { %s4491_s15 = sld [smem:[#allocation31_spill]] }
 0xf10   : > { %p27_p0 = scmp.ge.s32.totalorder %s4488_s16, 14  }
 0xf12   :  { %29 = sbr.rel (!%p27_p0) target bundleno = 14 (0xe), region = 192 }
 0xf17   :  { %2315 = vsyncpa [#allocation4], 1 }
 0xf18   :  { %2317 = vsyncpa [#allocation4 + $0x1], 1 }
 0xf19   :  { %2318 = vsyncpa [#allocation7], 1 }
 0xf1a   :  { %2319 = vsyncpa [#allocation10], 1 }
 0xf1b   :  { %2320 = vsyncpa [#allocation13], 1 }
 0xf1c   :  { %2321 = vsyncpa [#allocation5], 1 }
 0xf1d   :  { %2323 = vsyncpa [#allocation5 + $0x1], 1 }

</bundles_post_ra>
